<compile_context>
chip_gen: v5e
topology: v5e:2x2
jax: 0.10.0
libtpu: 0.0.40
codegen_flags: <defaults>
</compile_context>

<pallas_src>
import functools

import numpy as np
import jax
import jax.numpy as jnp
from jax import lax
from jax.experimental import pallas as pl
from jax.experimental.pallas import tpu as pltpu

_EPS = 1e-5


# ------------------------------- Pallas kernel ------------------------------- #

def _residual_block_kernel(xf_ref, v1_ref, b1_ref, v2_ref, b2_ref, out_ref, *, H, W, C):
    """Fused conv3x3+BN+ReLU (+Dropout=id) + reflect-pad + conv3x3+BN + skip, all on VPU.

    xf_ref : [1, H, W*C]        raw image, channels folded into lanes (lane = w*C + c)
    v*_ref : [3, 4C-1, W*C]     lane-phase tap weights (BN scale folded in)
    b*_ref : [1, W*C]           BN shift, tiled over w
    out_ref: [1, H, W*C]
    """
    WC = W * C
    NJ = 4 * C - 1
    x = xf_ref[0]                                            # [H, W*C], f32

    zcol = jnp.zeros((H + 2, C), jnp.float32)

    def reflect_pad(a):                                      # [H, WC] -> [H+2, (W+4)*C]
        # rows: ReflectionPad2d(1) (row -1 -> row 1, row H -> row H-2)
        rows = jnp.concatenate([a[1:2], a, a[H - 2:H - 1]], axis=0)
        left = rows[:, C:2 * C]                              # reflected column w = 1
        right = rows[:, (W - 2) * C:(W - 1) * C]             # reflected column w = W-2
        # zero lane margins of width C so every tap slice below is a valid static slice
        return jnp.concatenate([zcol, left, rows, right, zcol], axis=1)

    def conv3x3(ap, v):                                      # 9-tap conv as 3*(4C-1) VPU MACs
        acc = jnp.zeros((H, WC), jnp.float32)
        for dy in range(3):
            for jj in range(NJ):
                # output lane w*C+co pulls padded lane (w*C+co) + (jj-(C-1)) + C, i.e.
                # source pixel (h+dy, w+dx), channel ci with dx*C+ci = (jj-(C-1))+co;
                # lanes with no valid (dx, ci) carry a zero weight in v.
                acc = acc + v[dy, jj:jj + 1, :] * ap[dy:dy + H, jj + 1:jj + 1 + WC]
        return acc

    v1 = v1_ref[...]
    v2 = v2_ref[...]

    # block 1: conv -> BN (scale folded into v1, shift here) -> ReLU; Dropout(0.5)=identity (eval)
    h = jnp.maximum(conv3x3(reflect_pad(x), v1) + b1_ref[...], 0.0)
    # block 2: conv -> BN (scale folded into v2), then the residual skip connection
    y = conv3x3(reflect_pad(h), v2) + b2_ref[...] + x
    out_ref[0] = y.astype(out_ref.dtype)


# ------------------------------- glue / wrapper ------------------------------ #

def _bn_affine(gamma, beta, mean, var):
    scale = gamma / jnp.sqrt(var + _EPS)
    return scale, beta - mean * scale


def _tap_weight_lanes(w_oihw_scaled, C, W):
    """[Cout, Cin, 3, 3] (BN scale already folded) -> [3, 4C-1, W*C] lane-phase tap weights.

    V[dy, jj, w*C + co] = w[co, ci, dy, dx] where dx = (j+co)//C, ci = (j+co)%C with
    j = jj - (C-1), and 0 where j+co is out of [0, 3C).  Index table is a static numpy
    constant so this works under jit (single gather on the weight tensor).
    """
    NJ = 4 * C - 1
    idx = np.full((3, NJ, C), C * C * 9, dtype=np.int32)      # default -> appended zero slot
    for dy in range(3):
        for jj in range(NJ):
            j = jj - (C - 1)
            for co in range(C):
                t = j + co
                if 0 <= t < 3 * C:
                    dx, ci = divmod(t, C)
                    idx[dy, jj, co] = ((co * C + ci) * 3 + dy) * 3 + dx
    wflat = jnp.concatenate([w_oihw_scaled.reshape(-1),
                             jnp.zeros((1,), w_oihw_scaled.dtype)])
    v = wflat[jnp.asarray(idx)]                               # [3, 4C-1, C]
    return jnp.tile(v, (1, 1, W))                             # [3, 4C-1, W*C]


def residual_block_forward(x_nchw, params):
    """Equivalent of ResidualBlock.forward(x) in eval mode. Input/output NCHW, f32."""
    N, C, H, W = x_nchw.shape
    WC = W * C
    NJ = 4 * C - 1

    # channels-into-lanes layout: (N, H, W*C); lane index = w*C + c (no reflection pad here)
    xf = jnp.transpose(x_nchw, (0, 2, 3, 1)).reshape(N, H, WC)

    s1, b1 = _bn_affine(params["gamma1"], params["beta1"], params["mean1"], params["var1"])
    s2, b2 = _bn_affine(params["gamma2"], params["beta2"], params["mean2"], params["var2"])

    # Fold the BN scale into the conv weights (exact: the affine composes with the conv).
    v1 = _tap_weight_lanes(params["w1"] * s1[:, None, None, None], C, W)
    v2 = _tap_weight_lanes(params["w2"] * s2[:, None, None, None], C, W)
    b1_l = jnp.tile(b1, W)[None, :]                           # [1, W*C]
    b2_l = jnp.tile(b2, W)[None, :]

    resident3 = lambda n: (0, 0, 0)                           # weights: same block every image
    resident2 = lambda n: (0, 0)
    kernel = functools.partial(_residual_block_kernel, H=H, W=W, C=C)

    out = pl.pallas_call(
        kernel,
        grid=(N,),
        in_specs=[
            pl.BlockSpec((1, H, WC), lambda n: (n, 0, 0)),    # raw x, one image per step
            pl.BlockSpec((3, NJ, WC), resident3),             # conv1 tap weights (BN1 folded)
            pl.BlockSpec((1, WC), resident2),                 # BN1 shift
            pl.BlockSpec((3, NJ, WC), resident3),             # conv2 tap weights (BN2 folded)
            pl.BlockSpec((1, WC), resident2),                 # BN2 shift
        ],
        out_specs=pl.BlockSpec((1, H, WC), lambda n: (n, 0, 0)),
        out_shape=jax.ShapeDtypeStruct((N, H, WC), jnp.float32),
        compiler_params=pltpu.CompilerParams(
            dimension_semantics=("parallel",),
            vmem_limit_bytes=32 * 1024 * 1024),
    )(xf, v1, b1_l, v2, b2_l)

    return jnp.transpose(out.reshape(N, H, W, C), (0, 3, 1, 2))


# ------------------------------ pure-JAX reference --------------------------- #

def _ref_conv_bn(x_nchw, w_oihw, gamma, beta, mean, var, relu):
    xp = jnp.pad(x_nchw, ((0, 0), (0, 0), (1, 1), (1, 1)), mode="reflect")
    y = lax.conv_general_dilated(
        xp, w_oihw, (1, 1), "VALID",
        dimension_numbers=("NCHW", "OIHW", "NCHW"),
        precision=lax.Precision.HIGHEST)
    scale = (gamma / jnp.sqrt(var + _EPS))[None, :, None, None]
    shift = (beta - mean * gamma / jnp.sqrt(var + _EPS))[None, :, None, None]
    y = y * scale + shift
    return jnp.maximum(y, 0.0) if relu else y


def residual_block_reference(x_nchw, params):
    h = _ref_conv_bn(x_nchw, params["w1"], params["gamma1"], params["beta1"],
                     params["mean1"], params["var1"], relu=True)
    r = _ref_conv_bn(h, params["w2"], params["gamma2"], params["beta2"],
                     params["mean2"], params["var2"], relu=False)
    return x_nchw + r


# ------------------------------------ main ----------------------------------- #

def init_params(key, num_filters):
    ks = jax.random.split(key, 10)
    C = num_filters
    # Conv weights in PyTorch OIHW layout [Cout, Cin, 3, 3] (bias=False).
    w1 = jax.random.normal(ks[0], (C, C, 3, 3), jnp.float32) * 0.1
    w2 = jax.random.normal(ks[1], (C, C, 3, 3), jnp.float32) * 0.1
    return {
        "w1": w1, "w2": w2,
        "gamma1": 1.0 + 0.1 * jax.random.normal(ks[2], (C,), jnp.float32),
        "beta1": 0.1 * jax.random.normal(ks[3], (C,), jnp.float32),
        "mean1": 0.1 * jax.random.normal(ks[4], (C,), jnp.float32),
        "var1": 1.0 + 0.1 * jnp.abs(jax.random.normal(ks[5], (C,), jnp.float32)),
        "gamma2": 1.0 + 0.1 * jax.random.normal(ks[6], (C,), jnp.float32),
        "beta2": 0.1 * jax.random.normal(ks[7], (C,), jnp.float32),
        "mean2": 0.1 * jax.random.normal(ks[8], (C,), jnp.float32),
        "var2": 1.0 + 0.1 * jnp.abs(jax.random.normal(ks[9], (C,), jnp.float32)),
    }


if __name__ == "__main__":
    key = jax.random.PRNGKey(0)
    k_x, k_p = jax.random.split(key)

    N, C, H, W = 2, 4, 16, 16          # batch=2, num_filters=4, spatial=16x16 (NCHW)
    x = jax.random.normal(k_x, (N, C, H, W), jnp.float32)
    params = init_params(k_p, C)

    out = jax.block_until_ready(jax.jit(residual_block_forward)(x, params))
    ref = jax.block_until_ready(residual_block_reference(x, params))

    assert out.shape == x.shape and out.dtype == jnp.float32
    # Kernel runs entirely in f32 on the VPU (no bf16 MXU pass), so the tolerance is
    # back to (near) machine precision for this FLOP count.
    assert jnp.allclose(out, ref, atol=1e-4, rtol=1e-4), "mismatch vs reference"

    print("KERNEL_OK")
</pallas_src>

<mosaic_0001>
module attributes {stable_mosaic.version = 11 : i64} {
  func.func @_residual_block_kernel(%arg0: i32, %arg1: memref<1x16x64xf32, #tpu.memory_space<vmem>>, %arg2: memref<3x15x64xf32, #tpu.memory_space<vmem>>, %arg3: memref<1x64xf32, #tpu.memory_space<vmem>>, %arg4: memref<3x15x64xf32, #tpu.memory_space<vmem>>, %arg5: memref<1x64xf32, #tpu.memory_space<vmem>>, %arg6: memref<1x16x64xf32, #tpu.memory_space<vmem>>) attributes {dimension_semantics = [#tpu.dimension_semantics<parallel>], iteration_bounds = array<i64: 2>, scalar_prefetch = 0 : i64, scratch_operands = 0 : i64, tpu.core_type = #tpu.core_type<tc>, window_params = [{transform_indices = @transform_0, window_bounds = array<i64: 1, 16, 64>}, {pipeline_mode = #tpu.pipeline_mode<synchronous>, transform_indices = @transform_1, window_bounds = array<i64: 3, 15, 64>}, {pipeline_mode = #tpu.pipeline_mode<synchronous>, transform_indices = @transform_2, window_bounds = array<i64: 1, 64>}, {pipeline_mode = #tpu.pipeline_mode<synchronous>, transform_indices = @transform_3, window_bounds = array<i64: 3, 15, 64>}, {pipeline_mode = #tpu.pipeline_mode<synchronous>, transform_indices = @transform_4, window_bounds = array<i64: 1, 64>}, {transform_indices = @transform_5, window_bounds = array<i64: 1, 16, 64>}]} {
    %c0 = arith.constant 0 : index
    %c0_0 = arith.constant 0 : index
    %c0_1 = arith.constant 0 : index
    %0 = vector.load %arg1[%c0, %c0_0, %c0_1] : memref<1x16x64xf32, #tpu.memory_space<vmem>>, vector<1x16x64xf32>
    %1 = vector.shape_cast %0 : vector<1x16x64xf32> to vector<16x64xf32>
    %cst = arith.constant 0.000000e+00 : f32
    %2 = vector.broadcast %cst : f32 to vector<18x4xf32>
    %c0_2 = arith.constant 0 : index
    %c0_3 = arith.constant 0 : index
    %c0_4 = arith.constant 0 : index
    %3 = vector.load %arg2[%c0_2, %c0_3, %c0_4] : memref<3x15x64xf32, #tpu.memory_space<vmem>>, vector<3x15x64xf32>
    %c0_5 = arith.constant 0 : index
    %c0_6 = arith.constant 0 : index
    %c0_7 = arith.constant 0 : index
    %4 = vector.load %arg4[%c0_5, %c0_6, %c0_7] : memref<3x15x64xf32, #tpu.memory_space<vmem>>, vector<3x15x64xf32>
    %5 = vector.extract_strided_slice %1 {offsets = [1, 0], sizes = [1, 64], strides = [1, 1]} : vector<16x64xf32> to vector<1x64xf32>
    %6 = vector.extract_strided_slice %1 {offsets = [14, 0], sizes = [1, 64], strides = [1, 1]} : vector<16x64xf32> to vector<1x64xf32>
    %7 = tpu.concatenate %5, %1, %6 in 0 : vector<1x64xf32>, vector<16x64xf32>, vector<1x64xf32> -> vector<18x64xf32>
    %8 = vector.extract_strided_slice %7 {offsets = [0, 4], sizes = [18, 4], strides = [1, 1]} : vector<18x64xf32> to vector<18x4xf32>
    %9 = vector.extract_strided_slice %7 {offsets = [0, 56], sizes = [18, 4], strides = [1, 1]} : vector<18x64xf32> to vector<18x4xf32>
    %10 = tpu.concatenate %2, %8, %7, %9, %2 in 1 : vector<18x4xf32>, vector<18x4xf32>, vector<18x64xf32>, vector<18x4xf32>, vector<18x4xf32> -> vector<18x80xf32>
    %cst_8 = arith.constant 0.000000e+00 : f32
    %11 = vector.broadcast %cst_8 : f32 to vector<16x64xf32>
    %12 = vector.extract_strided_slice %3 {offsets = [0, 0, 0], sizes = [1, 1, 64], strides = [1, 1, 1]} : vector<3x15x64xf32> to vector<1x1x64xf32>
    %13 = vector.shape_cast %12 : vector<1x1x64xf32> to vector<1x64xf32>
    %14 = vector.extract_strided_slice %10 {offsets = [0, 1], sizes = [16, 64], strides = [1, 1]} : vector<18x80xf32> to vector<16x64xf32>
    %15 = vector.broadcast %13 : vector<1x64xf32> to vector<16x64xf32>
    %16 = arith.mulf %15, %14 : vector<16x64xf32>
    %17 = arith.addf %11, %16 : vector<16x64xf32>
    %18 = vector.extract_strided_slice %3 {offsets = [0, 1, 0], sizes = [1, 1, 64], strides = [1, 1, 1]} : vector<3x15x64xf32> to vector<1x1x64xf32>
    %19 = vector.shape_cast %18 : vector<1x1x64xf32> to vector<1x64xf32>
    %20 = vector.extract_strided_slice %10 {offsets = [0, 2], sizes = [16, 64], strides = [1, 1]} : vector<18x80xf32> to vector<16x64xf32>
    %21 = vector.broadcast %19 : vector<1x64xf32> to vector<16x64xf32>
    %22 = arith.mulf %21, %20 : vector<16x64xf32>
    %23 = arith.addf %17, %22 : vector<16x64xf32>
    %24 = vector.extract_strided_slice %3 {offsets = [0, 2, 0], sizes = [1, 1, 64], strides = [1, 1, 1]} : vector<3x15x64xf32> to vector<1x1x64xf32>
    %25 = vector.shape_cast %24 : vector<1x1x64xf32> to vector<1x64xf32>
    %26 = vector.extract_strided_slice %10 {offsets = [0, 3], sizes = [16, 64], strides = [1, 1]} : vector<18x80xf32> to vector<16x64xf32>
    %27 = vector.broadcast %25 : vector<1x64xf32> to vector<16x64xf32>
    %28 = arith.mulf %27, %26 : vector<16x64xf32>
    %29 = arith.addf %23, %28 : vector<16x64xf32>
    %30 = vector.extract_strided_slice %3 {offsets = [0, 3, 0], sizes = [1, 1, 64], strides = [1, 1, 1]} : vector<3x15x64xf32> to vector<1x1x64xf32>
    %31 = vector.shape_cast %30 : vector<1x1x64xf32> to vector<1x64xf32>
    %32 = vector.extract_strided_slice %10 {offsets = [0, 4], sizes = [16, 64], strides = [1, 1]} : vector<18x80xf32> to vector<16x64xf32>
    %33 = vector.broadcast %31 : vector<1x64xf32> to vector<16x64xf32>
    %34 = arith.mulf %33, %32 : vector<16x64xf32>
    %35 = arith.addf %29, %34 : vector<16x64xf32>
    %36 = vector.extract_strided_slice %3 {offsets = [0, 4, 0], sizes = [1, 1, 64], strides = [1, 1, 1]} : vector<3x15x64xf32> to vector<1x1x64xf32>
    %37 = vector.shape_cast %36 : vector<1x1x64xf32> to vector<1x64xf32>
    %38 = vector.extract_strided_slice %10 {offsets = [0, 5], sizes = [16, 64], strides = [1, 1]} : vector<18x80xf32> to vector<16x64xf32>
    %39 = vector.broadcast %37 : vector<1x64xf32> to vector<16x64xf32>
    %40 = arith.mulf %39, %38 : vector<16x64xf32>
    %41 = arith.addf %35, %40 : vector<16x64xf32>
    %42 = vector.extract_strided_slice %3 {offsets = [0, 5, 0], sizes = [1, 1, 64], strides = [1, 1, 1]} : vector<3x15x64xf32> to vector<1x1x64xf32>
    %43 = vector.shape_cast %42 : vector<1x1x64xf32> to vector<1x64xf32>
    %44 = vector.extract_strided_slice %10 {offsets = [0, 6], sizes = [16, 64], strides = [1, 1]} : vector<18x80xf32> to vector<16x64xf32>
    %45 = vector.broadcast %43 : vector<1x64xf32> to vector<16x64xf32>
    %46 = arith.mulf %45, %44 : vector<16x64xf32>
    %47 = arith.addf %41, %46 : vector<16x64xf32>
    %48 = vector.extract_strided_slice %3 {offsets = [0, 6, 0], sizes = [1, 1, 64], strides = [1, 1, 1]} : vector<3x15x64xf32> to vector<1x1x64xf32>
    %49 = vector.shape_cast %48 : vector<1x1x64xf32> to vector<1x64xf32>
    %50 = vector.extract_strided_slice %10 {offsets = [0, 7], sizes = [16, 64], strides = [1, 1]} : vector<18x80xf32> to vector<16x64xf32>
    %51 = vector.broadcast %49 : vector<1x64xf32> to vector<16x64xf32>
    %52 = arith.mulf %51, %50 : vector<16x64xf32>
    %53 = arith.addf %47, %52 : vector<16x64xf32>
    %54 = vector.extract_strided_slice %3 {offsets = [0, 7, 0], sizes = [1, 1, 64], strides = [1, 1, 1]} : vector<3x15x64xf32> to vector<1x1x64xf32>
    %55 = vector.shape_cast %54 : vector<1x1x64xf32> to vector<1x64xf32>
    %56 = vector.extract_strided_slice %10 {offsets = [0, 8], sizes = [16, 64], strides = [1, 1]} : vector<18x80xf32> to vector<16x64xf32>
    %57 = vector.broadcast %55 : vector<1x64xf32> to vector<16x64xf32>
    %58 = arith.mulf %57, %56 : vector<16x64xf32>
    %59 = arith.addf %53, %58 : vector<16x64xf32>
    %60 = vector.extract_strided_slice %3 {offsets = [0, 8, 0], sizes = [1, 1, 64], strides = [1, 1, 1]} : vector<3x15x64xf32> to vector<1x1x64xf32>
    %61 = vector.shape_cast %60 : vector<1x1x64xf32> to vector<1x64xf32>
    %62 = vector.extract_strided_slice %10 {offsets = [0, 9], sizes = [16, 64], strides = [1, 1]} : vector<18x80xf32> to vector<16x64xf32>
    %63 = vector.broadcast %61 : vector<1x64xf32> to vector<16x64xf32>
    %64 = arith.mulf %63, %62 : vector<16x64xf32>
    %65 = arith.addf %59, %64 : vector<16x64xf32>
    %66 = vector.extract_strided_slice %3 {offsets = [0, 9, 0], sizes = [1, 1, 64], strides = [1, 1, 1]} : vector<3x15x64xf32> to vector<1x1x64xf32>
    %67 = vector.shape_cast %66 : vector<1x1x64xf32> to vector<1x64xf32>
    %68 = vector.extract_strided_slice %10 {offsets = [0, 10], sizes = [16, 64], strides = [1, 1]} : vector<18x80xf32> to vector<16x64xf32>
    %69 = vector.broadcast %67 : vector<1x64xf32> to vector<16x64xf32>
    %70 = arith.mulf %69, %68 : vector<16x64xf32>
    %71 = arith.addf %65, %70 : vector<16x64xf32>
    %72 = vector.extract_strided_slice %3 {offsets = [0, 10, 0], sizes = [1, 1, 64], strides = [1, 1, 1]} : vector<3x15x64xf32> to vector<1x1x64xf32>
    %73 = vector.shape_cast %72 : vector<1x1x64xf32> to vector<1x64xf32>
    %74 = vector.extract_strided_slice %10 {offsets = [0, 11], sizes = [16, 64], strides = [1, 1]} : vector<18x80xf32> to vector<16x64xf32>
    %75 = vector.broadcast %73 : vector<1x64xf32> to vector<16x64xf32>
    %76 = arith.mulf %75, %74 : vector<16x64xf32>
    %77 = arith.addf %71, %76 : vector<16x64xf32>
    %78 = vector.extract_strided_slice %3 {offsets = [0, 11, 0], sizes = [1, 1, 64], strides = [1, 1, 1]} : vector<3x15x64xf32> to vector<1x1x64xf32>
    %79 = vector.shape_cast %78 : vector<1x1x64xf32> to vector<1x64xf32>
    %80 = vector.extract_strided_slice %10 {offsets = [0, 12], sizes = [16, 64], strides = [1, 1]} : vector<18x80xf32> to vector<16x64xf32>
    %81 = vector.broadcast %79 : vector<1x64xf32> to vector<16x64xf32>
    %82 = arith.mulf %81, %80 : vector<16x64xf32>
    %83 = arith.addf %77, %82 : vector<16x64xf32>
    %84 = vector.extract_strided_slice %3 {offsets = [0, 12, 0], sizes = [1, 1, 64], strides = [1, 1, 1]} : vector<3x15x64xf32> to vector<1x1x64xf32>
    %85 = vector.shape_cast %84 : vector<1x1x64xf32> to vector<1x64xf32>
    %86 = vector.extract_strided_slice %10 {offsets = [0, 13], sizes = [16, 64], strides = [1, 1]} : vector<18x80xf32> to vector<16x64xf32>
    %87 = vector.broadcast %85 : vector<1x64xf32> to vector<16x64xf32>
    %88 = arith.mulf %87, %86 : vector<16x64xf32>
    %89 = arith.addf %83, %88 : vector<16x64xf32>
    %90 = vector.extract_strided_slice %3 {offsets = [0, 13, 0], sizes = [1, 1, 64], strides = [1, 1, 1]} : vector<3x15x64xf32> to vector<1x1x64xf32>
    %91 = vector.shape_cast %90 : vector<1x1x64xf32> to vector<1x64xf32>
    %92 = vector.extract_strided_slice %10 {offsets = [0, 14], sizes = [16, 64], strides = [1, 1]} : vector<18x80xf32> to vector<16x64xf32>
    %93 = vector.broadcast %91 : vector<1x64xf32> to vector<16x64xf32>
    %94 = arith.mulf %93, %92 : vector<16x64xf32>
    %95 = arith.addf %89, %94 : vector<16x64xf32>
    %96 = vector.extract_strided_slice %3 {offsets = [0, 14, 0], sizes = [1, 1, 64], strides = [1, 1, 1]} : vector<3x15x64xf32> to vector<1x1x64xf32>
    %97 = vector.shape_cast %96 : vector<1x1x64xf32> to vector<1x64xf32>
    %98 = vector.extract_strided_slice %10 {offsets = [0, 15], sizes = [16, 64], strides = [1, 1]} : vector<18x80xf32> to vector<16x64xf32>
    %99 = vector.broadcast %97 : vector<1x64xf32> to vector<16x64xf32>
    %100 = arith.mulf %99, %98 : vector<16x64xf32>
    %101 = arith.addf %95, %100 : vector<16x64xf32>
    %102 = vector.extract_strided_slice %3 {offsets = [1, 0, 0], sizes = [1, 1, 64], strides = [1, 1, 1]} : vector<3x15x64xf32> to vector<1x1x64xf32>
    %103 = vector.shape_cast %102 : vector<1x1x64xf32> to vector<1x64xf32>
    %104 = vector.extract_strided_slice %10 {offsets = [1, 1], sizes = [16, 64], strides = [1, 1]} : vector<18x80xf32> to vector<16x64xf32>
    %105 = vector.broadcast %103 : vector<1x64xf32> to vector<16x64xf32>
    %106 = arith.mulf %105, %104 : vector<16x64xf32>
    %107 = arith.addf %101, %106 : vector<16x64xf32>
    %108 = vector.extract_strided_slice %3 {offsets = [1, 1, 0], sizes = [1, 1, 64], strides = [1, 1, 1]} : vector<3x15x64xf32> to vector<1x1x64xf32>
    %109 = vector.shape_cast %108 : vector<1x1x64xf32> to vector<1x64xf32>
    %110 = vector.extract_strided_slice %10 {offsets = [1, 2], sizes = [16, 64], strides = [1, 1]} : vector<18x80xf32> to vector<16x64xf32>
    %111 = vector.broadcast %109 : vector<1x64xf32> to vector<16x64xf32>
    %112 = arith.mulf %111, %110 : vector<16x64xf32>
    %113 = arith.addf %107, %112 : vector<16x64xf32>
    %114 = vector.extract_strided_slice %3 {offsets = [1, 2, 0], sizes = [1, 1, 64], strides = [1, 1, 1]} : vector<3x15x64xf32> to vector<1x1x64xf32>
    %115 = vector.shape_cast %114 : vector<1x1x64xf32> to vector<1x64xf32>
    %116 = vector.extract_strided_slice %10 {offsets = [1, 3], sizes = [16, 64], strides = [1, 1]} : vector<18x80xf32> to vector<16x64xf32>
    %117 = vector.broadcast %115 : vector<1x64xf32> to vector<16x64xf32>
    %118 = arith.mulf %117, %116 : vector<16x64xf32>
    %119 = arith.addf %113, %118 : vector<16x64xf32>
    %120 = vector.extract_strided_slice %3 {offsets = [1, 3, 0], sizes = [1, 1, 64], strides = [1, 1, 1]} : vector<3x15x64xf32> to vector<1x1x64xf32>
    %121 = vector.shape_cast %120 : vector<1x1x64xf32> to vector<1x64xf32>
    %122 = vector.extract_strided_slice %10 {offsets = [1, 4], sizes = [16, 64], strides = [1, 1]} : vector<18x80xf32> to vector<16x64xf32>
    %123 = vector.broadcast %121 : vector<1x64xf32> to vector<16x64xf32>
    %124 = arith.mulf %123, %122 : vector<16x64xf32>
    %125 = arith.addf %119, %124 : vector<16x64xf32>
    %126 = vector.extract_strided_slice %3 {offsets = [1, 4, 0], sizes = [1, 1, 64], strides = [1, 1, 1]} : vector<3x15x64xf32> to vector<1x1x64xf32>
    %127 = vector.shape_cast %126 : vector<1x1x64xf32> to vector<1x64xf32>
    %128 = vector.extract_strided_slice %10 {offsets = [1, 5], sizes = [16, 64], strides = [1, 1]} : vector<18x80xf32> to vector<16x64xf32>
    %129 = vector.broadcast %127 : vector<1x64xf32> to vector<16x64xf32>
    %130 = arith.mulf %129, %128 : vector<16x64xf32>
    %131 = arith.addf %125, %130 : vector<16x64xf32>
    %132 = vector.extract_strided_slice %3 {offsets = [1, 5, 0], sizes = [1, 1, 64], strides = [1, 1, 1]} : vector<3x15x64xf32> to vector<1x1x64xf32>
    %133 = vector.shape_cast %132 : vector<1x1x64xf32> to vector<1x64xf32>
    %134 = vector.extract_strided_slice %10 {offsets = [1, 6], sizes = [16, 64], strides = [1, 1]} : vector<18x80xf32> to vector<16x64xf32>
    %135 = vector.broadcast %133 : vector<1x64xf32> to vector<16x64xf32>
    %136 = arith.mulf %135, %134 : vector<16x64xf32>
    %137 = arith.addf %131, %136 : vector<16x64xf32>
    %138 = vector.extract_strided_slice %3 {offsets = [1, 6, 0], sizes = [1, 1, 64], strides = [1, 1, 1]} : vector<3x15x64xf32> to vector<1x1x64xf32>
    %139 = vector.shape_cast %138 : vector<1x1x64xf32> to vector<1x64xf32>
    %140 = vector.extract_strided_slice %10 {offsets = [1, 7], sizes = [16, 64], strides = [1, 1]} : vector<18x80xf32> to vector<16x64xf32>
    %141 = vector.broadcast %139 : vector<1x64xf32> to vector<16x64xf32>
    %142 = arith.mulf %141, %140 : vector<16x64xf32>
    %143 = arith.addf %137, %142 : vector<16x64xf32>
    %144 = vector.extract_strided_slice %3 {offsets = [1, 7, 0], sizes = [1, 1, 64], strides = [1, 1, 1]} : vector<3x15x64xf32> to vector<1x1x64xf32>
    %145 = vector.shape_cast %144 : vector<1x1x64xf32> to vector<1x64xf32>
    %146 = vector.extract_strided_slice %10 {offsets = [1, 8], sizes = [16, 64], strides = [1, 1]} : vector<18x80xf32> to vector<16x64xf32>
    %147 = vector.broadcast %145 : vector<1x64xf32> to vector<16x64xf32>
    %148 = arith.mulf %147, %146 : vector<16x64xf32>
    %149 = arith.addf %143, %148 : vector<16x64xf32>
    %150 = vector.extract_strided_slice %3 {offsets = [1, 8, 0], sizes = [1, 1, 64], strides = [1, 1, 1]} : vector<3x15x64xf32> to vector<1x1x64xf32>
    %151 = vector.shape_cast %150 : vector<1x1x64xf32> to vector<1x64xf32>
    %152 = vector.extract_strided_slice %10 {offsets = [1, 9], sizes = [16, 64], strides = [1, 1]} : vector<18x80xf32> to vector<16x64xf32>
    %153 = vector.broadcast %151 : vector<1x64xf32> to vector<16x64xf32>
    %154 = arith.mulf %153, %152 : vector<16x64xf32>
    %155 = arith.addf %149, %154 : vector<16x64xf32>
    %156 = vector.extract_strided_slice %3 {offsets = [1, 9, 0], sizes = [1, 1, 64], strides = [1, 1, 1]} : vector<3x15x64xf32> to vector<1x1x64xf32>
    %157 = vector.shape_cast %156 : vector<1x1x64xf32> to vector<1x64xf32>
    %158 = vector.extract_strided_slice %10 {offsets = [1, 10], sizes = [16, 64], strides = [1, 1]} : vector<18x80xf32> to vector<16x64xf32>
    %159 = vector.broadcast %157 : vector<1x64xf32> to vector<16x64xf32>
    %160 = arith.mulf %159, %158 : vector<16x64xf32>
    %161 = arith.addf %155, %160 : vector<16x64xf32>
    %162 = vector.extract_strided_slice %3 {offsets = [1, 10, 0], sizes = [1, 1, 64], strides = [1, 1, 1]} : vector<3x15x64xf32> to vector<1x1x64xf32>
    %163 = vector.shape_cast %162 : vector<1x1x64xf32> to vector<1x64xf32>
    %164 = vector.extract_strided_slice %10 {offsets = [1, 11], sizes = [16, 64], strides = [1, 1]} : vector<18x80xf32> to vector<16x64xf32>
    %165 = vector.broadcast %163 : vector<1x64xf32> to vector<16x64xf32>
    %166 = arith.mulf %165, %164 : vector<16x64xf32>
    %167 = arith.addf %161, %166 : vector<16x64xf32>
    %168 = vector.extract_strided_slice %3 {offsets = [1, 11, 0], sizes = [1, 1, 64], strides = [1, 1, 1]} : vector<3x15x64xf32> to vector<1x1x64xf32>
    %169 = vector.shape_cast %168 : vector<1x1x64xf32> to vector<1x64xf32>
    %170 = vector.extract_strided_slice %10 {offsets = [1, 12], sizes = [16, 64], strides = [1, 1]} : vector<18x80xf32> to vector<16x64xf32>
    %171 = vector.broadcast %169 : vector<1x64xf32> to vector<16x64xf32>
    %172 = arith.mulf %171, %170 : vector<16x64xf32>
    %173 = arith.addf %167, %172 : vector<16x64xf32>
    %174 = vector.extract_strided_slice %3 {offsets = [1, 12, 0], sizes = [1, 1, 64], strides = [1, 1, 1]} : vector<3x15x64xf32> to vector<1x1x64xf32>
    %175 = vector.shape_cast %174 : vector<1x1x64xf32> to vector<1x64xf32>
    %176 = vector.extract_strided_slice %10 {offsets = [1, 13], sizes = [16, 64], strides = [1, 1]} : vector<18x80xf32> to vector<16x64xf32>
    %177 = vector.broadcast %175 : vector<1x64xf32> to vector<16x64xf32>
    %178 = arith.mulf %177, %176 : vector<16x64xf32>
    %179 = arith.addf %173, %178 : vector<16x64xf32>
    %180 = vector.extract_strided_slice %3 {offsets = [1, 13, 0], sizes = [1, 1, 64], strides = [1, 1, 1]} : vector<3x15x64xf32> to vector<1x1x64xf32>
    %181 = vector.shape_cast %180 : vector<1x1x64xf32> to vector<1x64xf32>
    %182 = vector.extract_strided_slice %10 {offsets = [1, 14], sizes = [16, 64], strides = [1, 1]} : vector<18x80xf32> to vector<16x64xf32>
    %183 = vector.broadcast %181 : vector<1x64xf32> to vector<16x64xf32>
    %184 = arith.mulf %183, %182 : vector<16x64xf32>
    %185 = arith.addf %179, %184 : vector<16x64xf32>
    %186 = vector.extract_strided_slice %3 {offsets = [1, 14, 0], sizes = [1, 1, 64], strides = [1, 1, 1]} : vector<3x15x64xf32> to vector<1x1x64xf32>
    %187 = vector.shape_cast %186 : vector<1x1x64xf32> to vector<1x64xf32>
    %188 = vector.extract_strided_slice %10 {offsets = [1, 15], sizes = [16, 64], strides = [1, 1]} : vector<18x80xf32> to vector<16x64xf32>
    %189 = vector.broadcast %187 : vector<1x64xf32> to vector<16x64xf32>
    %190 = arith.mulf %189, %188 : vector<16x64xf32>
    %191 = arith.addf %185, %190 : vector<16x64xf32>
    %192 = vector.extract_strided_slice %3 {offsets = [2, 0, 0], sizes = [1, 1, 64], strides = [1, 1, 1]} : vector<3x15x64xf32> to vector<1x1x64xf32>
    %193 = vector.shape_cast %192 : vector<1x1x64xf32> to vector<1x64xf32>
    %194 = vector.extract_strided_slice %10 {offsets = [2, 1], sizes = [16, 64], strides = [1, 1]} : vector<18x80xf32> to vector<16x64xf32>
    %195 = vector.broadcast %193 : vector<1x64xf32> to vector<16x64xf32>
    %196 = arith.mulf %195, %194 : vector<16x64xf32>
    %197 = arith.addf %191, %196 : vector<16x64xf32>
    %198 = vector.extract_strided_slice %3 {offsets = [2, 1, 0], sizes = [1, 1, 64], strides = [1, 1, 1]} : vector<3x15x64xf32> to vector<1x1x64xf32>
    %199 = vector.shape_cast %198 : vector<1x1x64xf32> to vector<1x64xf32>
    %200 = vector.extract_strided_slice %10 {offsets = [2, 2], sizes = [16, 64], strides = [1, 1]} : vector<18x80xf32> to vector<16x64xf32>
    %201 = vector.broadcast %199 : vector<1x64xf32> to vector<16x64xf32>
    %202 = arith.mulf %201, %200 : vector<16x64xf32>
    %203 = arith.addf %197, %202 : vector<16x64xf32>
    %204 = vector.extract_strided_slice %3 {offsets = [2, 2, 0], sizes = [1, 1, 64], strides = [1, 1, 1]} : vector<3x15x64xf32> to vector<1x1x64xf32>
    %205 = vector.shape_cast %204 : vector<1x1x64xf32> to vector<1x64xf32>
    %206 = vector.extract_strided_slice %10 {offsets = [2, 3], sizes = [16, 64], strides = [1, 1]} : vector<18x80xf32> to vector<16x64xf32>
    %207 = vector.broadcast %205 : vector<1x64xf32> to vector<16x64xf32>
    %208 = arith.mulf %207, %206 : vector<16x64xf32>
    %209 = arith.addf %203, %208 : vector<16x64xf32>
    %210 = vector.extract_strided_slice %3 {offsets = [2, 3, 0], sizes = [1, 1, 64], strides = [1, 1, 1]} : vector<3x15x64xf32> to vector<1x1x64xf32>
    %211 = vector.shape_cast %210 : vector<1x1x64xf32> to vector<1x64xf32>
    %212 = vector.extract_strided_slice %10 {offsets = [2, 4], sizes = [16, 64], strides = [1, 1]} : vector<18x80xf32> to vector<16x64xf32>
    %213 = vector.broadcast %211 : vector<1x64xf32> to vector<16x64xf32>
    %214 = arith.mulf %213, %212 : vector<16x64xf32>
    %215 = arith.addf %209, %214 : vector<16x64xf32>
    %216 = vector.extract_strided_slice %3 {offsets = [2, 4, 0], sizes = [1, 1, 64], strides = [1, 1, 1]} : vector<3x15x64xf32> to vector<1x1x64xf32>
    %217 = vector.shape_cast %216 : vector<1x1x64xf32> to vector<1x64xf32>
    %218 = vector.extract_strided_slice %10 {offsets = [2, 5], sizes = [16, 64], strides = [1, 1]} : vector<18x80xf32> to vector<16x64xf32>
    %219 = vector.broadcast %217 : vector<1x64xf32> to vector<16x64xf32>
    %220 = arith.mulf %219, %218 : vector<16x64xf32>
    %221 = arith.addf %215, %220 : vector<16x64xf32>
    %222 = vector.extract_strided_slice %3 {offsets = [2, 5, 0], sizes = [1, 1, 64], strides = [1, 1, 1]} : vector<3x15x64xf32> to vector<1x1x64xf32>
    %223 = vector.shape_cast %222 : vector<1x1x64xf32> to vector<1x64xf32>
    %224 = vector.extract_strided_slice %10 {offsets = [2, 6], sizes = [16, 64], strides = [1, 1]} : vector<18x80xf32> to vector<16x64xf32>
    %225 = vector.broadcast %223 : vector<1x64xf32> to vector<16x64xf32>
    %226 = arith.mulf %225, %224 : vector<16x64xf32>
    %227 = arith.addf %221, %226 : vector<16x64xf32>
    %228 = vector.extract_strided_slice %3 {offsets = [2, 6, 0], sizes = [1, 1, 64], strides = [1, 1, 1]} : vector<3x15x64xf32> to vector<1x1x64xf32>
    %229 = vector.shape_cast %228 : vector<1x1x64xf32> to vector<1x64xf32>
    %230 = vector.extract_strided_slice %10 {offsets = [2, 7], sizes = [16, 64], strides = [1, 1]} : vector<18x80xf32> to vector<16x64xf32>
    %231 = vector.broadcast %229 : vector<1x64xf32> to vector<16x64xf32>
    %232 = arith.mulf %231, %230 : vector<16x64xf32>
    %233 = arith.addf %227, %232 : vector<16x64xf32>
    %234 = vector.extract_strided_slice %3 {offsets = [2, 7, 0], sizes = [1, 1, 64], strides = [1, 1, 1]} : vector<3x15x64xf32> to vector<1x1x64xf32>
    %235 = vector.shape_cast %234 : vector<1x1x64xf32> to vector<1x64xf32>
    %236 = vector.extract_strided_slice %10 {offsets = [2, 8], sizes = [16, 64], strides = [1, 1]} : vector<18x80xf32> to vector<16x64xf32>
    %237 = vector.broadcast %235 : vector<1x64xf32> to vector<16x64xf32>
    %238 = arith.mulf %237, %236 : vector<16x64xf32>
    %239 = arith.addf %233, %238 : vector<16x64xf32>
    %240 = vector.extract_strided_slice %3 {offsets = [2, 8, 0], sizes = [1, 1, 64], strides = [1, 1, 1]} : vector<3x15x64xf32> to vector<1x1x64xf32>
    %241 = vector.shape_cast %240 : vector<1x1x64xf32> to vector<1x64xf32>
    %242 = vector.extract_strided_slice %10 {offsets = [2, 9], sizes = [16, 64], strides = [1, 1]} : vector<18x80xf32> to vector<16x64xf32>
    %243 = vector.broadcast %241 : vector<1x64xf32> to vector<16x64xf32>
    %244 = arith.mulf %243, %242 : vector<16x64xf32>
    %245 = arith.addf %239, %244 : vector<16x64xf32>
    %246 = vector.extract_strided_slice %3 {offsets = [2, 9, 0], sizes = [1, 1, 64], strides = [1, 1, 1]} : vector<3x15x64xf32> to vector<1x1x64xf32>
    %247 = vector.shape_cast %246 : vector<1x1x64xf32> to vector<1x64xf32>
    %248 = vector.extract_strided_slice %10 {offsets = [2, 10], sizes = [16, 64], strides = [1, 1]} : vector<18x80xf32> to vector<16x64xf32>
    %249 = vector.broadcast %247 : vector<1x64xf32> to vector<16x64xf32>
    %250 = arith.mulf %249, %248 : vector<16x64xf32>
    %251 = arith.addf %245, %250 : vector<16x64xf32>
    %252 = vector.extract_strided_slice %3 {offsets = [2, 10, 0], sizes = [1, 1, 64], strides = [1, 1, 1]} : vector<3x15x64xf32> to vector<1x1x64xf32>
    %253 = vector.shape_cast %252 : vector<1x1x64xf32> to vector<1x64xf32>
    %254 = vector.extract_strided_slice %10 {offsets = [2, 11], sizes = [16, 64], strides = [1, 1]} : vector<18x80xf32> to vector<16x64xf32>
    %255 = vector.broadcast %253 : vector<1x64xf32> to vector<16x64xf32>
    %256 = arith.mulf %255, %254 : vector<16x64xf32>
    %257 = arith.addf %251, %256 : vector<16x64xf32>
    %258 = vector.extract_strided_slice %3 {offsets = [2, 11, 0], sizes = [1, 1, 64], strides = [1, 1, 1]} : vector<3x15x64xf32> to vector<1x1x64xf32>
    %259 = vector.shape_cast %258 : vector<1x1x64xf32> to vector<1x64xf32>
    %260 = vector.extract_strided_slice %10 {offsets = [2, 12], sizes = [16, 64], strides = [1, 1]} : vector<18x80xf32> to vector<16x64xf32>
    %261 = vector.broadcast %259 : vector<1x64xf32> to vector<16x64xf32>
    %262 = arith.mulf %261, %260 : vector<16x64xf32>
    %263 = arith.addf %257, %262 : vector<16x64xf32>
    %264 = vector.extract_strided_slice %3 {offsets = [2, 12, 0], sizes = [1, 1, 64], strides = [1, 1, 1]} : vector<3x15x64xf32> to vector<1x1x64xf32>
    %265 = vector.shape_cast %264 : vector<1x1x64xf32> to vector<1x64xf32>
    %266 = vector.extract_strided_slice %10 {offsets = [2, 13], sizes = [16, 64], strides = [1, 1]} : vector<18x80xf32> to vector<16x64xf32>
    %267 = vector.broadcast %265 : vector<1x64xf32> to vector<16x64xf32>
    %268 = arith.mulf %267, %266 : vector<16x64xf32>
    %269 = arith.addf %263, %268 : vector<16x64xf32>
    %270 = vector.extract_strided_slice %3 {offsets = [2, 13, 0], sizes = [1, 1, 64], strides = [1, 1, 1]} : vector<3x15x64xf32> to vector<1x1x64xf32>
    %271 = vector.shape_cast %270 : vector<1x1x64xf32> to vector<1x64xf32>
    %272 = vector.extract_strided_slice %10 {offsets = [2, 14], sizes = [16, 64], strides = [1, 1]} : vector<18x80xf32> to vector<16x64xf32>
    %273 = vector.broadcast %271 : vector<1x64xf32> to vector<16x64xf32>
    %274 = arith.mulf %273, %272 : vector<16x64xf32>
    %275 = arith.addf %269, %274 : vector<16x64xf32>
    %276 = vector.extract_strided_slice %3 {offsets = [2, 14, 0], sizes = [1, 1, 64], strides = [1, 1, 1]} : vector<3x15x64xf32> to vector<1x1x64xf32>
    %277 = vector.shape_cast %276 : vector<1x1x64xf32> to vector<1x64xf32>
    %278 = vector.extract_strided_slice %10 {offsets = [2, 15], sizes = [16, 64], strides = [1, 1]} : vector<18x80xf32> to vector<16x64xf32>
    %279 = vector.broadcast %277 : vector<1x64xf32> to vector<16x64xf32>
    %280 = arith.mulf %279, %278 : vector<16x64xf32>
    %281 = arith.addf %275, %280 : vector<16x64xf32>
    %c0_9 = arith.constant 0 : index
    %c0_10 = arith.constant 0 : index
    %282 = vector.load %arg3[%c0_9, %c0_10] : memref<1x64xf32, #tpu.memory_space<vmem>>, vector<1x64xf32>
    %283 = vector.broadcast %282 : vector<1x64xf32> to vector<16x64xf32>
    %284 = arith.addf %281, %283 : vector<16x64xf32>
    %cst_11 = arith.constant 0.000000e+00 : f32
    %285 = vector.broadcast %cst_11 : f32 to vector<16x64xf32>
    %286 = arith.maximumf %284, %285 : vector<16x64xf32>
    %287 = vector.extract_strided_slice %286 {offsets = [1, 0], sizes = [1, 64], strides = [1, 1]} : vector<16x64xf32> to vector<1x64xf32>
    %288 = vector.extract_strided_slice %286 {offsets = [14, 0], sizes = [1, 64], strides = [1, 1]} : vector<16x64xf32> to vector<1x64xf32>
    %289 = tpu.concatenate %287, %286, %288 in 0 : vector<1x64xf32>, vector<16x64xf32>, vector<1x64xf32> -> vector<18x64xf32>
    %290 = vector.extract_strided_slice %289 {offsets = [0, 4], sizes = [18, 4], strides = [1, 1]} : vector<18x64xf32> to vector<18x4xf32>
    %291 = vector.extract_strided_slice %289 {offsets = [0, 56], sizes = [18, 4], strides = [1, 1]} : vector<18x64xf32> to vector<18x4xf32>
    %292 = tpu.concatenate %2, %290, %289, %291, %2 in 1 : vector<18x4xf32>, vector<18x4xf32>, vector<18x64xf32>, vector<18x4xf32>, vector<18x4xf32> -> vector<18x80xf32>
    %cst_12 = arith.constant 0.000000e+00 : f32
    %293 = vector.broadcast %cst_12 : f32 to vector<16x64xf32>
    %294 = vector.extract_strided_slice %4 {offsets = [0, 0, 0], sizes = [1, 1, 64], strides = [1, 1, 1]} : vector<3x15x64xf32> to vector<1x1x64xf32>
    %295 = vector.shape_cast %294 : vector<1x1x64xf32> to vector<1x64xf32>
    %296 = vector.extract_strided_slice %292 {offsets = [0, 1], sizes = [16, 64], strides = [1, 1]} : vector<18x80xf32> to vector<16x64xf32>
    %297 = vector.broadcast %295 : vector<1x64xf32> to vector<16x64xf32>
    %298 = arith.mulf %297, %296 : vector<16x64xf32>
    %299 = arith.addf %293, %298 : vector<16x64xf32>
    %300 = vector.extract_strided_slice %4 {offsets = [0, 1, 0], sizes = [1, 1, 64], strides = [1, 1, 1]} : vector<3x15x64xf32> to vector<1x1x64xf32>
    %301 = vector.shape_cast %300 : vector<1x1x64xf32> to vector<1x64xf32>
    %302 = vector.extract_strided_slice %292 {offsets = [0, 2], sizes = [16, 64], strides = [1, 1]} : vector<18x80xf32> to vector<16x64xf32>
    %303 = vector.broadcast %301 : vector<1x64xf32> to vector<16x64xf32>
    %304 = arith.mulf %303, %302 : vector<16x64xf32>
    %305 = arith.addf %299, %304 : vector<16x64xf32>
    %306 = vector.extract_strided_slice %4 {offsets = [0, 2, 0], sizes = [1, 1, 64], strides = [1, 1, 1]} : vector<3x15x64xf32> to vector<1x1x64xf32>
    %307 = vector.shape_cast %306 : vector<1x1x64xf32> to vector<1x64xf32>
    %308 = vector.extract_strided_slice %292 {offsets = [0, 3], sizes = [16, 64], strides = [1, 1]} : vector<18x80xf32> to vector<16x64xf32>
    %309 = vector.broadcast %307 : vector<1x64xf32> to vector<16x64xf32>
    %310 = arith.mulf %309, %308 : vector<16x64xf32>
    %311 = arith.addf %305, %310 : vector<16x64xf32>
    %312 = vector.extract_strided_slice %4 {offsets = [0, 3, 0], sizes = [1, 1, 64], strides = [1, 1, 1]} : vector<3x15x64xf32> to vector<1x1x64xf32>
    %313 = vector.shape_cast %312 : vector<1x1x64xf32> to vector<1x64xf32>
    %314 = vector.extract_strided_slice %292 {offsets = [0, 4], sizes = [16, 64], strides = [1, 1]} : vector<18x80xf32> to vector<16x64xf32>
    %315 = vector.broadcast %313 : vector<1x64xf32> to vector<16x64xf32>
    %316 = arith.mulf %315, %314 : vector<16x64xf32>
    %317 = arith.addf %311, %316 : vector<16x64xf32>
    %318 = vector.extract_strided_slice %4 {offsets = [0, 4, 0], sizes = [1, 1, 64], strides = [1, 1, 1]} : vector<3x15x64xf32> to vector<1x1x64xf32>
    %319 = vector.shape_cast %318 : vector<1x1x64xf32> to vector<1x64xf32>
    %320 = vector.extract_strided_slice %292 {offsets = [0, 5], sizes = [16, 64], strides = [1, 1]} : vector<18x80xf32> to vector<16x64xf32>
    %321 = vector.broadcast %319 : vector<1x64xf32> to vector<16x64xf32>
    %322 = arith.mulf %321, %320 : vector<16x64xf32>
    %323 = arith.addf %317, %322 : vector<16x64xf32>
    %324 = vector.extract_strided_slice %4 {offsets = [0, 5, 0], sizes = [1, 1, 64], strides = [1, 1, 1]} : vector<3x15x64xf32> to vector<1x1x64xf32>
    %325 = vector.shape_cast %324 : vector<1x1x64xf32> to vector<1x64xf32>
    %326 = vector.extract_strided_slice %292 {offsets = [0, 6], sizes = [16, 64], strides = [1, 1]} : vector<18x80xf32> to vector<16x64xf32>
    %327 = vector.broadcast %325 : vector<1x64xf32> to vector<16x64xf32>
    %328 = arith.mulf %327, %326 : vector<16x64xf32>
    %329 = arith.addf %323, %328 : vector<16x64xf32>
    %330 = vector.extract_strided_slice %4 {offsets = [0, 6, 0], sizes = [1, 1, 64], strides = [1, 1, 1]} : vector<3x15x64xf32> to vector<1x1x64xf32>
    %331 = vector.shape_cast %330 : vector<1x1x64xf32> to vector<1x64xf32>
    %332 = vector.extract_strided_slice %292 {offsets = [0, 7], sizes = [16, 64], strides = [1, 1]} : vector<18x80xf32> to vector<16x64xf32>
    %333 = vector.broadcast %331 : vector<1x64xf32> to vector<16x64xf32>
    %334 = arith.mulf %333, %332 : vector<16x64xf32>
    %335 = arith.addf %329, %334 : vector<16x64xf32>
    %336 = vector.extract_strided_slice %4 {offsets = [0, 7, 0], sizes = [1, 1, 64], strides = [1, 1, 1]} : vector<3x15x64xf32> to vector<1x1x64xf32>
    %337 = vector.shape_cast %336 : vector<1x1x64xf32> to vector<1x64xf32>
    %338 = vector.extract_strided_slice %292 {offsets = [0, 8], sizes = [16, 64], strides = [1, 1]} : vector<18x80xf32> to vector<16x64xf32>
    %339 = vector.broadcast %337 : vector<1x64xf32> to vector<16x64xf32>
    %340 = arith.mulf %339, %338 : vector<16x64xf32>
    %341 = arith.addf %335, %340 : vector<16x64xf32>
    %342 = vector.extract_strided_slice %4 {offsets = [0, 8, 0], sizes = [1, 1, 64], strides = [1, 1, 1]} : vector<3x15x64xf32> to vector<1x1x64xf32>
    %343 = vector.shape_cast %342 : vector<1x1x64xf32> to vector<1x64xf32>
    %344 = vector.extract_strided_slice %292 {offsets = [0, 9], sizes = [16, 64], strides = [1, 1]} : vector<18x80xf32> to vector<16x64xf32>
    %345 = vector.broadcast %343 : vector<1x64xf32> to vector<16x64xf32>
    %346 = arith.mulf %345, %344 : vector<16x64xf32>
    %347 = arith.addf %341, %346 : vector<16x64xf32>
    %348 = vector.extract_strided_slice %4 {offsets = [0, 9, 0], sizes = [1, 1, 64], strides = [1, 1, 1]} : vector<3x15x64xf32> to vector<1x1x64xf32>
    %349 = vector.shape_cast %348 : vector<1x1x64xf32> to vector<1x64xf32>
    %350 = vector.extract_strided_slice %292 {offsets = [0, 10], sizes = [16, 64], strides = [1, 1]} : vector<18x80xf32> to vector<16x64xf32>
    %351 = vector.broadcast %349 : vector<1x64xf32> to vector<16x64xf32>
    %352 = arith.mulf %351, %350 : vector<16x64xf32>
    %353 = arith.addf %347, %352 : vector<16x64xf32>
    %354 = vector.extract_strided_slice %4 {offsets = [0, 10, 0], sizes = [1, 1, 64], strides = [1, 1, 1]} : vector<3x15x64xf32> to vector<1x1x64xf32>
    %355 = vector.shape_cast %354 : vector<1x1x64xf32> to vector<1x64xf32>
    %356 = vector.extract_strided_slice %292 {offsets = [0, 11], sizes = [16, 64], strides = [1, 1]} : vector<18x80xf32> to vector<16x64xf32>
    %357 = vector.broadcast %355 : vector<1x64xf32> to vector<16x64xf32>
    %358 = arith.mulf %357, %356 : vector<16x64xf32>
    %359 = arith.addf %353, %358 : vector<16x64xf32>
    %360 = vector.extract_strided_slice %4 {offsets = [0, 11, 0], sizes = [1, 1, 64], strides = [1, 1, 1]} : vector<3x15x64xf32> to vector<1x1x64xf32>
    %361 = vector.shape_cast %360 : vector<1x1x64xf32> to vector<1x64xf32>
    %362 = vector.extract_strided_slice %292 {offsets = [0, 12], sizes = [16, 64], strides = [1, 1]} : vector<18x80xf32> to vector<16x64xf32>
    %363 = vector.broadcast %361 : vector<1x64xf32> to vector<16x64xf32>
    %364 = arith.mulf %363, %362 : vector<16x64xf32>
    %365 = arith.addf %359, %364 : vector<16x64xf32>
    %366 = vector.extract_strided_slice %4 {offsets = [0, 12, 0], sizes = [1, 1, 64], strides = [1, 1, 1]} : vector<3x15x64xf32> to vector<1x1x64xf32>
    %367 = vector.shape_cast %366 : vector<1x1x64xf32> to vector<1x64xf32>
    %368 = vector.extract_strided_slice %292 {offsets = [0, 13], sizes = [16, 64], strides = [1, 1]} : vector<18x80xf32> to vector<16x64xf32>
    %369 = vector.broadcast %367 : vector<1x64xf32> to vector<16x64xf32>
    %370 = arith.mulf %369, %368 : vector<16x64xf32>
    %371 = arith.addf %365, %370 : vector<16x64xf32>
    %372 = vector.extract_strided_slice %4 {offsets = [0, 13, 0], sizes = [1, 1, 64], strides = [1, 1, 1]} : vector<3x15x64xf32> to vector<1x1x64xf32>
    %373 = vector.shape_cast %372 : vector<1x1x64xf32> to vector<1x64xf32>
    %374 = vector.extract_strided_slice %292 {offsets = [0, 14], sizes = [16, 64], strides = [1, 1]} : vector<18x80xf32> to vector<16x64xf32>
    %375 = vector.broadcast %373 : vector<1x64xf32> to vector<16x64xf32>
    %376 = arith.mulf %375, %374 : vector<16x64xf32>
    %377 = arith.addf %371, %376 : vector<16x64xf32>
    %378 = vector.extract_strided_slice %4 {offsets = [0, 14, 0], sizes = [1, 1, 64], strides = [1, 1, 1]} : vector<3x15x64xf32> to vector<1x1x64xf32>
    %379 = vector.shape_cast %378 : vector<1x1x64xf32> to vector<1x64xf32>
    %380 = vector.extract_strided_slice %292 {offsets = [0, 15], sizes = [16, 64], strides = [1, 1]} : vector<18x80xf32> to vector<16x64xf32>
    %381 = vector.broadcast %379 : vector<1x64xf32> to vector<16x64xf32>
    %382 = arith.mulf %381, %380 : vector<16x64xf32>
    %383 = arith.addf %377, %382 : vector<16x64xf32>
    %384 = vector.extract_strided_slice %4 {offsets = [1, 0, 0], sizes = [1, 1, 64], strides = [1, 1, 1]} : vector<3x15x64xf32> to vector<1x1x64xf32>
    %385 = vector.shape_cast %384 : vector<1x1x64xf32> to vector<1x64xf32>
    %386 = vector.extract_strided_slice %292 {offsets = [1, 1], sizes = [16, 64], strides = [1, 1]} : vector<18x80xf32> to vector<16x64xf32>
    %387 = vector.broadcast %385 : vector<1x64xf32> to vector<16x64xf32>
    %388 = arith.mulf %387, %386 : vector<16x64xf32>
    %389 = arith.addf %383, %388 : vector<16x64xf32>
    %390 = vector.extract_strided_slice %4 {offsets = [1, 1, 0], sizes = [1, 1, 64], strides = [1, 1, 1]} : vector<3x15x64xf32> to vector<1x1x64xf32>
    %391 = vector.shape_cast %390 : vector<1x1x64xf32> to vector<1x64xf32>
    %392 = vector.extract_strided_slice %292 {offsets = [1, 2], sizes = [16, 64], strides = [1, 1]} : vector<18x80xf32> to vector<16x64xf32>
    %393 = vector.broadcast %391 : vector<1x64xf32> to vector<16x64xf32>
    %394 = arith.mulf %393, %392 : vector<16x64xf32>
    %395 = arith.addf %389, %394 : vector<16x64xf32>
    %396 = vector.extract_strided_slice %4 {offsets = [1, 2, 0], sizes = [1, 1, 64], strides = [1, 1, 1]} : vector<3x15x64xf32> to vector<1x1x64xf32>
    %397 = vector.shape_cast %396 : vector<1x1x64xf32> to vector<1x64xf32>
    %398 = vector.extract_strided_slice %292 {offsets = [1, 3], sizes = [16, 64], strides = [1, 1]} : vector<18x80xf32> to vector<16x64xf32>
    %399 = vector.broadcast %397 : vector<1x64xf32> to vector<16x64xf32>
    %400 = arith.mulf %399, %398 : vector<16x64xf32>
    %401 = arith.addf %395, %400 : vector<16x64xf32>
    %402 = vector.extract_strided_slice %4 {offsets = [1, 3, 0], sizes = [1, 1, 64], strides = [1, 1, 1]} : vector<3x15x64xf32> to vector<1x1x64xf32>
    %403 = vector.shape_cast %402 : vector<1x1x64xf32> to vector<1x64xf32>
    %404 = vector.extract_strided_slice %292 {offsets = [1, 4], sizes = [16, 64], strides = [1, 1]} : vector<18x80xf32> to vector<16x64xf32>
    %405 = vector.broadcast %403 : vector<1x64xf32> to vector<16x64xf32>
    %406 = arith.mulf %405, %404 : vector<16x64xf32>
    %407 = arith.addf %401, %406 : vector<16x64xf32>
    %408 = vector.extract_strided_slice %4 {offsets = [1, 4, 0], sizes = [1, 1, 64], strides = [1, 1, 1]} : vector<3x15x64xf32> to vector<1x1x64xf32>
    %409 = vector.shape_cast %408 : vector<1x1x64xf32> to vector<1x64xf32>
    %410 = vector.extract_strided_slice %292 {offsets = [1, 5], sizes = [16, 64], strides = [1, 1]} : vector<18x80xf32> to vector<16x64xf32>
    %411 = vector.broadcast %409 : vector<1x64xf32> to vector<16x64xf32>
    %412 = arith.mulf %411, %410 : vector<16x64xf32>
    %413 = arith.addf %407, %412 : vector<16x64xf32>
    %414 = vector.extract_strided_slice %4 {offsets = [1, 5, 0], sizes = [1, 1, 64], strides = [1, 1, 1]} : vector<3x15x64xf32> to vector<1x1x64xf32>
    %415 = vector.shape_cast %414 : vector<1x1x64xf32> to vector<1x64xf32>
    %416 = vector.extract_strided_slice %292 {offsets = [1, 6], sizes = [16, 64], strides = [1, 1]} : vector<18x80xf32> to vector<16x64xf32>
    %417 = vector.broadcast %415 : vector<1x64xf32> to vector<16x64xf32>
    %418 = arith.mulf %417, %416 : vector<16x64xf32>
    %419 = arith.addf %413, %418 : vector<16x64xf32>
    %420 = vector.extract_strided_slice %4 {offsets = [1, 6, 0], sizes = [1, 1, 64], strides = [1, 1, 1]} : vector<3x15x64xf32> to vector<1x1x64xf32>
    %421 = vector.shape_cast %420 : vector<1x1x64xf32> to vector<1x64xf32>
    %422 = vector.extract_strided_slice %292 {offsets = [1, 7], sizes = [16, 64], strides = [1, 1]} : vector<18x80xf32> to vector<16x64xf32>
    %423 = vector.broadcast %421 : vector<1x64xf32> to vector<16x64xf32>
    %424 = arith.mulf %423, %422 : vector<16x64xf32>
    %425 = arith.addf %419, %424 : vector<16x64xf32>
    %426 = vector.extract_strided_slice %4 {offsets = [1, 7, 0], sizes = [1, 1, 64], strides = [1, 1, 1]} : vector<3x15x64xf32> to vector<1x1x64xf32>
    %427 = vector.shape_cast %426 : vector<1x1x64xf32> to vector<1x64xf32>
    %428 = vector.extract_strided_slice %292 {offsets = [1, 8], sizes = [16, 64], strides = [1, 1]} : vector<18x80xf32> to vector<16x64xf32>
    %429 = vector.broadcast %427 : vector<1x64xf32> to vector<16x64xf32>
    %430 = arith.mulf %429, %428 : vector<16x64xf32>
    %431 = arith.addf %425, %430 : vector<16x64xf32>
    %432 = vector.extract_strided_slice %4 {offsets = [1, 8, 0], sizes = [1, 1, 64], strides = [1, 1, 1]} : vector<3x15x64xf32> to vector<1x1x64xf32>
    %433 = vector.shape_cast %432 : vector<1x1x64xf32> to vector<1x64xf32>
    %434 = vector.extract_strided_slice %292 {offsets = [1, 9], sizes = [16, 64], strides = [1, 1]} : vector<18x80xf32> to vector<16x64xf32>
    %435 = vector.broadcast %433 : vector<1x64xf32> to vector<16x64xf32>
    %436 = arith.mulf %435, %434 : vector<16x64xf32>
    %437 = arith.addf %431, %436 : vector<16x64xf32>
    %438 = vector.extract_strided_slice %4 {offsets = [1, 9, 0], sizes = [1, 1, 64], strides = [1, 1, 1]} : vector<3x15x64xf32> to vector<1x1x64xf32>
    %439 = vector.shape_cast %438 : vector<1x1x64xf32> to vector<1x64xf32>
    %440 = vector.extract_strided_slice %292 {offsets = [1, 10], sizes = [16, 64], strides = [1, 1]} : vector<18x80xf32> to vector<16x64xf32>
    %441 = vector.broadcast %439 : vector<1x64xf32> to vector<16x64xf32>
    %442 = arith.mulf %441, %440 : vector<16x64xf32>
    %443 = arith.addf %437, %442 : vector<16x64xf32>
    %444 = vector.extract_strided_slice %4 {offsets = [1, 10, 0], sizes = [1, 1, 64], strides = [1, 1, 1]} : vector<3x15x64xf32> to vector<1x1x64xf32>
    %445 = vector.shape_cast %444 : vector<1x1x64xf32> to vector<1x64xf32>
    %446 = vector.extract_strided_slice %292 {offsets = [1, 11], sizes = [16, 64], strides = [1, 1]} : vector<18x80xf32> to vector<16x64xf32>
    %447 = vector.broadcast %445 : vector<1x64xf32> to vector<16x64xf32>
    %448 = arith.mulf %447, %446 : vector<16x64xf32>
    %449 = arith.addf %443, %448 : vector<16x64xf32>
    %450 = vector.extract_strided_slice %4 {offsets = [1, 11, 0], sizes = [1, 1, 64], strides = [1, 1, 1]} : vector<3x15x64xf32> to vector<1x1x64xf32>
    %451 = vector.shape_cast %450 : vector<1x1x64xf32> to vector<1x64xf32>
    %452 = vector.extract_strided_slice %292 {offsets = [1, 12], sizes = [16, 64], strides = [1, 1]} : vector<18x80xf32> to vector<16x64xf32>
    %453 = vector.broadcast %451 : vector<1x64xf32> to vector<16x64xf32>
    %454 = arith.mulf %453, %452 : vector<16x64xf32>
    %455 = arith.addf %449, %454 : vector<16x64xf32>
    %456 = vector.extract_strided_slice %4 {offsets = [1, 12, 0], sizes = [1, 1, 64], strides = [1, 1, 1]} : vector<3x15x64xf32> to vector<1x1x64xf32>
    %457 = vector.shape_cast %456 : vector<1x1x64xf32> to vector<1x64xf32>
    %458 = vector.extract_strided_slice %292 {offsets = [1, 13], sizes = [16, 64], strides = [1, 1]} : vector<18x80xf32> to vector<16x64xf32>
    %459 = vector.broadcast %457 : vector<1x64xf32> to vector<16x64xf32>
    %460 = arith.mulf %459, %458 : vector<16x64xf32>
    %461 = arith.addf %455, %460 : vector<16x64xf32>
    %462 = vector.extract_strided_slice %4 {offsets = [1, 13, 0], sizes = [1, 1, 64], strides = [1, 1, 1]} : vector<3x15x64xf32> to vector<1x1x64xf32>
    %463 = vector.shape_cast %462 : vector<1x1x64xf32> to vector<1x64xf32>
    %464 = vector.extract_strided_slice %292 {offsets = [1, 14], sizes = [16, 64], strides = [1, 1]} : vector<18x80xf32> to vector<16x64xf32>
    %465 = vector.broadcast %463 : vector<1x64xf32> to vector<16x64xf32>
    %466 = arith.mulf %465, %464 : vector<16x64xf32>
    %467 = arith.addf %461, %466 : vector<16x64xf32>
    %468 = vector.extract_strided_slice %4 {offsets = [1, 14, 0], sizes = [1, 1, 64], strides = [1, 1, 1]} : vector<3x15x64xf32> to vector<1x1x64xf32>
    %469 = vector.shape_cast %468 : vector<1x1x64xf32> to vector<1x64xf32>
    %470 = vector.extract_strided_slice %292 {offsets = [1, 15], sizes = [16, 64], strides = [1, 1]} : vector<18x80xf32> to vector<16x64xf32>
    %471 = vector.broadcast %469 : vector<1x64xf32> to vector<16x64xf32>
    %472 = arith.mulf %471, %470 : vector<16x64xf32>
    %473 = arith.addf %467, %472 : vector<16x64xf32>
    %474 = vector.extract_strided_slice %4 {offsets = [2, 0, 0], sizes = [1, 1, 64], strides = [1, 1, 1]} : vector<3x15x64xf32> to vector<1x1x64xf32>
    %475 = vector.shape_cast %474 : vector<1x1x64xf32> to vector<1x64xf32>
    %476 = vector.extract_strided_slice %292 {offsets = [2, 1], sizes = [16, 64], strides = [1, 1]} : vector<18x80xf32> to vector<16x64xf32>
    %477 = vector.broadcast %475 : vector<1x64xf32> to vector<16x64xf32>
    %478 = arith.mulf %477, %476 : vector<16x64xf32>
    %479 = arith.addf %473, %478 : vector<16x64xf32>
    %480 = vector.extract_strided_slice %4 {offsets = [2, 1, 0], sizes = [1, 1, 64], strides = [1, 1, 1]} : vector<3x15x64xf32> to vector<1x1x64xf32>
    %481 = vector.shape_cast %480 : vector<1x1x64xf32> to vector<1x64xf32>
    %482 = vector.extract_strided_slice %292 {offsets = [2, 2], sizes = [16, 64], strides = [1, 1]} : vector<18x80xf32> to vector<16x64xf32>
    %483 = vector.broadcast %481 : vector<1x64xf32> to vector<16x64xf32>
    %484 = arith.mulf %483, %482 : vector<16x64xf32>
    %485 = arith.addf %479, %484 : vector<16x64xf32>
    %486 = vector.extract_strided_slice %4 {offsets = [2, 2, 0], sizes = [1, 1, 64], strides = [1, 1, 1]} : vector<3x15x64xf32> to vector<1x1x64xf32>
    %487 = vector.shape_cast %486 : vector<1x1x64xf32> to vector<1x64xf32>
    %488 = vector.extract_strided_slice %292 {offsets = [2, 3], sizes = [16, 64], strides = [1, 1]} : vector<18x80xf32> to vector<16x64xf32>
    %489 = vector.broadcast %487 : vector<1x64xf32> to vector<16x64xf32>
    %490 = arith.mulf %489, %488 : vector<16x64xf32>
    %491 = arith.addf %485, %490 : vector<16x64xf32>
    %492 = vector.extract_strided_slice %4 {offsets = [2, 3, 0], sizes = [1, 1, 64], strides = [1, 1, 1]} : vector<3x15x64xf32> to vector<1x1x64xf32>
    %493 = vector.shape_cast %492 : vector<1x1x64xf32> to vector<1x64xf32>
    %494 = vector.extract_strided_slice %292 {offsets = [2, 4], sizes = [16, 64], strides = [1, 1]} : vector<18x80xf32> to vector<16x64xf32>
    %495 = vector.broadcast %493 : vector<1x64xf32> to vector<16x64xf32>
    %496 = arith.mulf %495, %494 : vector<16x64xf32>
    %497 = arith.addf %491, %496 : vector<16x64xf32>
    %498 = vector.extract_strided_slice %4 {offsets = [2, 4, 0], sizes = [1, 1, 64], strides = [1, 1, 1]} : vector<3x15x64xf32> to vector<1x1x64xf32>
    %499 = vector.shape_cast %498 : vector<1x1x64xf32> to vector<1x64xf32>
    %500 = vector.extract_strided_slice %292 {offsets = [2, 5], sizes = [16, 64], strides = [1, 1]} : vector<18x80xf32> to vector<16x64xf32>
    %501 = vector.broadcast %499 : vector<1x64xf32> to vector<16x64xf32>
    %502 = arith.mulf %501, %500 : vector<16x64xf32>
    %503 = arith.addf %497, %502 : vector<16x64xf32>
    %504 = vector.extract_strided_slice %4 {offsets = [2, 5, 0], sizes = [1, 1, 64], strides = [1, 1, 1]} : vector<3x15x64xf32> to vector<1x1x64xf32>
    %505 = vector.shape_cast %504 : vector<1x1x64xf32> to vector<1x64xf32>
    %506 = vector.extract_strided_slice %292 {offsets = [2, 6], sizes = [16, 64], strides = [1, 1]} : vector<18x80xf32> to vector<16x64xf32>
    %507 = vector.broadcast %505 : vector<1x64xf32> to vector<16x64xf32>
    %508 = arith.mulf %507, %506 : vector<16x64xf32>
    %509 = arith.addf %503, %508 : vector<16x64xf32>
    %510 = vector.extract_strided_slice %4 {offsets = [2, 6, 0], sizes = [1, 1, 64], strides = [1, 1, 1]} : vector<3x15x64xf32> to vector<1x1x64xf32>
    %511 = vector.shape_cast %510 : vector<1x1x64xf32> to vector<1x64xf32>
    %512 = vector.extract_strided_slice %292 {offsets = [2, 7], sizes = [16, 64], strides = [1, 1]} : vector<18x80xf32> to vector<16x64xf32>
    %513 = vector.broadcast %511 : vector<1x64xf32> to vector<16x64xf32>
    %514 = arith.mulf %513, %512 : vector<16x64xf32>
    %515 = arith.addf %509, %514 : vector<16x64xf32>
    %516 = vector.extract_strided_slice %4 {offsets = [2, 7, 0], sizes = [1, 1, 64], strides = [1, 1, 1]} : vector<3x15x64xf32> to vector<1x1x64xf32>
    %517 = vector.shape_cast %516 : vector<1x1x64xf32> to vector<1x64xf32>
    %518 = vector.extract_strided_slice %292 {offsets = [2, 8], sizes = [16, 64], strides = [1, 1]} : vector<18x80xf32> to vector<16x64xf32>
    %519 = vector.broadcast %517 : vector<1x64xf32> to vector<16x64xf32>
    %520 = arith.mulf %519, %518 : vector<16x64xf32>
    %521 = arith.addf %515, %520 : vector<16x64xf32>
    %522 = vector.extract_strided_slice %4 {offsets = [2, 8, 0], sizes = [1, 1, 64], strides = [1, 1, 1]} : vector<3x15x64xf32> to vector<1x1x64xf32>
    %523 = vector.shape_cast %522 : vector<1x1x64xf32> to vector<1x64xf32>
    %524 = vector.extract_strided_slice %292 {offsets = [2, 9], sizes = [16, 64], strides = [1, 1]} : vector<18x80xf32> to vector<16x64xf32>
    %525 = vector.broadcast %523 : vector<1x64xf32> to vector<16x64xf32>
    %526 = arith.mulf %525, %524 : vector<16x64xf32>
    %527 = arith.addf %521, %526 : vector<16x64xf32>
    %528 = vector.extract_strided_slice %4 {offsets = [2, 9, 0], sizes = [1, 1, 64], strides = [1, 1, 1]} : vector<3x15x64xf32> to vector<1x1x64xf32>
    %529 = vector.shape_cast %528 : vector<1x1x64xf32> to vector<1x64xf32>
    %530 = vector.extract_strided_slice %292 {offsets = [2, 10], sizes = [16, 64], strides = [1, 1]} : vector<18x80xf32> to vector<16x64xf32>
    %531 = vector.broadcast %529 : vector<1x64xf32> to vector<16x64xf32>
    %532 = arith.mulf %531, %530 : vector<16x64xf32>
    %533 = arith.addf %527, %532 : vector<16x64xf32>
    %534 = vector.extract_strided_slice %4 {offsets = [2, 10, 0], sizes = [1, 1, 64], strides = [1, 1, 1]} : vector<3x15x64xf32> to vector<1x1x64xf32>
    %535 = vector.shape_cast %534 : vector<1x1x64xf32> to vector<1x64xf32>
    %536 = vector.extract_strided_slice %292 {offsets = [2, 11], sizes = [16, 64], strides = [1, 1]} : vector<18x80xf32> to vector<16x64xf32>
    %537 = vector.broadcast %535 : vector<1x64xf32> to vector<16x64xf32>
    %538 = arith.mulf %537, %536 : vector<16x64xf32>
    %539 = arith.addf %533, %538 : vector<16x64xf32>
    %540 = vector.extract_strided_slice %4 {offsets = [2, 11, 0], sizes = [1, 1, 64], strides = [1, 1, 1]} : vector<3x15x64xf32> to vector<1x1x64xf32>
    %541 = vector.shape_cast %540 : vector<1x1x64xf32> to vector<1x64xf32>
    %542 = vector.extract_strided_slice %292 {offsets = [2, 12], sizes = [16, 64], strides = [1, 1]} : vector<18x80xf32> to vector<16x64xf32>
    %543 = vector.broadcast %541 : vector<1x64xf32> to vector<16x64xf32>
    %544 = arith.mulf %543, %542 : vector<16x64xf32>
    %545 = arith.addf %539, %544 : vector<16x64xf32>
    %546 = vector.extract_strided_slice %4 {offsets = [2, 12, 0], sizes = [1, 1, 64], strides = [1, 1, 1]} : vector<3x15x64xf32> to vector<1x1x64xf32>
    %547 = vector.shape_cast %546 : vector<1x1x64xf32> to vector<1x64xf32>
    %548 = vector.extract_strided_slice %292 {offsets = [2, 13], sizes = [16, 64], strides = [1, 1]} : vector<18x80xf32> to vector<16x64xf32>
    %549 = vector.broadcast %547 : vector<1x64xf32> to vector<16x64xf32>
    %550 = arith.mulf %549, %548 : vector<16x64xf32>
    %551 = arith.addf %545, %550 : vector<16x64xf32>
    %552 = vector.extract_strided_slice %4 {offsets = [2, 13, 0], sizes = [1, 1, 64], strides = [1, 1, 1]} : vector<3x15x64xf32> to vector<1x1x64xf32>
    %553 = vector.shape_cast %552 : vector<1x1x64xf32> to vector<1x64xf32>
    %554 = vector.extract_strided_slice %292 {offsets = [2, 14], sizes = [16, 64], strides = [1, 1]} : vector<18x80xf32> to vector<16x64xf32>
    %555 = vector.broadcast %553 : vector<1x64xf32> to vector<16x64xf32>
    %556 = arith.mulf %555, %554 : vector<16x64xf32>
    %557 = arith.addf %551, %556 : vector<16x64xf32>
    %558 = vector.extract_strided_slice %4 {offsets = [2, 14, 0], sizes = [1, 1, 64], strides = [1, 1, 1]} : vector<3x15x64xf32> to vector<1x1x64xf32>
    %559 = vector.shape_cast %558 : vector<1x1x64xf32> to vector<1x64xf32>
    %560 = vector.extract_strided_slice %292 {offsets = [2, 15], sizes = [16, 64], strides = [1, 1]} : vector<18x80xf32> to vector<16x64xf32>
    %561 = vector.broadcast %559 : vector<1x64xf32> to vector<16x64xf32>
    %562 = arith.mulf %561, %560 : vector<16x64xf32>
    %563 = arith.addf %557, %562 : vector<16x64xf32>
    %c0_13 = arith.constant 0 : index
    %c0_14 = arith.constant 0 : index
    %564 = vector.load %arg5[%c0_13, %c0_14] : memref<1x64xf32, #tpu.memory_space<vmem>>, vector<1x64xf32>
    %565 = vector.broadcast %564 : vector<1x64xf32> to vector<16x64xf32>
    %566 = arith.addf %563, %565 : vector<16x64xf32>
    %567 = arith.addf %566, %1 : vector<16x64xf32>
    %c0_15 = arith.constant 0 : index
    %c0_16 = arith.constant 0 : index
    %c0_17 = arith.constant 0 : index
    %568 = vector.load %arg6[%c0_15, %c0_16, %c0_17] : memref<1x16x64xf32, #tpu.memory_space<vmem>>, vector<1x16x64xf32>
    %569 = vector.shape_cast %568 : vector<1x16x64xf32> to vector<16x64xf32>
    %570 = vector.shape_cast %567 : vector<16x64xf32> to vector<1x16x64xf32>
    tpu.vector_store %arg6[%c0_15, %c0_16, %c0_17], %570 {strides = array<i32>} : memref<1x16x64xf32, #tpu.memory_space<vmem>>, vector<1x16x64xf32>,
    return
  }
  func.func @transform_0(%arg0: i32) -> (i32, i32, i32) {
    %c0_i32 = arith.constant 0 : i32
    %c0_i32_0 = arith.constant 0 : i32
    %c0_i32_1 = arith.constant 0 : i32
    return %arg0, %c0_i32, %c0_i32_0 : i32, i32, i32
  }
  func.func @transform_1(%arg0: i32) -> (i32, i32, i32) {
    %c0_i32 = arith.constant 0 : i32
    %c0_i32_0 = arith.constant 0 : i32
    %c0_i32_1 = arith.constant 0 : i32
    %c0_i32_2 = arith.constant 0 : i32
    return %c0_i32, %c0_i32_0, %c0_i32_1 : i32, i32, i32
  }
  func.func @transform_2(%arg0: i32) -> (i32, i32) {
    %c0_i32 = arith.constant 0 : i32
    %c0_i32_0 = arith.constant 0 : i32
    %c0_i32_1 = arith.constant 0 : i32
    return %c0_i32, %c0_i32_0 : i32, i32
  }
  func.func @transform_3(%arg0: i32) -> (i32, i32, i32) {
    %c0_i32 = arith.constant 0 : i32
    %c0_i32_0 = arith.constant 0 : i32
    %c0_i32_1 = arith.constant 0 : i32
    %c0_i32_2 = arith.constant 0 : i32
    return %c0_i32, %c0_i32_0, %c0_i32_1 : i32, i32, i32
  }
  func.func @transform_4(%arg0: i32) -> (i32, i32) {
    %c0_i32 = arith.constant 0 : i32
    %c0_i32_0 = arith.constant 0 : i32
    %c0_i32_1 = arith.constant 0 : i32
    return %c0_i32, %c0_i32_0 : i32, i32
  }
  func.func @transform_5(%arg0: i32) -> (i32, i32, i32) {
    %c0_i32 = arith.constant 0 : i32
    %c0_i32_0 = arith.constant 0 : i32
    %c0_i32_1 = arith.constant 0 : i32
    return %arg0, %c0_i32, %c0_i32_0 : i32, i32, i32
  }
}

</mosaic_0001>

<bundles_post_ra>
// kernel: tile.33
= control target key start
LH: loop header
LB: loop body
LE: loop exit
PB: predicated region body
PF: predicated region fallthrough
CT: control target
= control target key end

     0   :  { %s28_s0 = inlined_call_operand.vmem [shape: f32[4], index: 0, kind: input, shape index: {}]   ;;  %s29_s1 = inlined_call_operand.vmem [shape: f32[16,4], index: 1, kind: output, shape index: {}]  }
   0x1   :  { %v4_v0 = vld [vmem:[%s28_s0] ss:$0 sm:$0xff] }
   0x2   :  { %5 = vst [vmem:[%s29_s1] sm:$0xff] %v4_v0 }
   0x3   :  { %8 = vst [vmem:[%s29_s1 + $0x8] sm:$0xff] %v4_v0 }

// kernel: tile.34
= control target key start
LH: loop header
LB: loop body
LE: loop exit
PB: predicated region body
PF: predicated region fallthrough
CT: control target
= control target key end

     0   :  { %s131_s10 = smov 60   ;;  %s132_s11 = smov 52   ;;  %vm3_vm0 = vcmask 31744   ;;  %vm9_vm1 = vcmask 523744   ;;  %vm15_vm2 = vcmask 490944   ;;  %vm21_vm3 = vcmask 458144   ;;  %s207_s0 = inlined_call_operand.vmem [shape: f32[16,4], index: 0, kind: input, shape index: {}]   ;;  %s208_s1 = inlined_call_operand.vmem [shape: f32[1,64], index: 1, kind: output, shape index: {}]  }
   0x1   :  { %v101_v0 = vld [vmem:[%s207_s0 + $0xf] sm:$0x1]   ;;  %v103_v1 = vld [vmem:[%s207_s0 + $0xd] sm:$0x1]   ;;  %v105_v2 = vld [vmem:[%s207_s0 + $0xb] sm:$0x1]  }
   0x2   :  { %7 = vrot.lane.b32.xlu0 %v101_v0, %s131_s10  ;;  %19 = vrot.lane.b32.xlu1 %v103_v1, %s132_s11  ;;  %s133_s14 = smov 44   ;;  %v102_v3 = vld [vmem:[%s207_s0 + $0xe] sm:$0x1]   ;;  %v104_v4 = vld [vmem:[%s207_s0 + $0xc] sm:$0x1]   ;;  %s134_s19 = smov 56  }
   0x3   :  { %31 = vrot.lane.b32.xlu2 %v105_v2, %s133_s14  ;;  %s135_s20 = smov 48   ;;  %v106_v5 = vld [vmem:[%s207_s0 + $0xa] sm:$0x1]   ;;  %s136_s23 = smov 40   ;;  %v107_v6 = vld [vmem:[%s207_s0 + $0x9] sm:$0x1]  }
   0x4   :  { %v108_v7 = vld [vmem:[%s207_s0 + $0x8] sm:$0x1]   ;;  %s137_s28 = smov 36   ;;  %s138_s29 = smov 32   ;;  %v109_v8 = vld [vmem:[%s207_s0 + $0x7] sm:$0x1]  }
   0x5   :  { %s139_s3 = smov 28   ;;  %v110_v9 = vld [vmem:[%s207_s0 + $0x6] sm:$0x1]   ;;  %v111_v10 = vld [vmem:[%s207_s0 + $0x5] sm:$0x1]   ;;  %s140_s8 = smov 24  }
   0x6   :  { %s141_s9 = smov 20   ;;  %v112_v11 = vld [vmem:[%s207_s0 + $0x4] sm:$0x1]   ;;  %s142_s12 = smov 16   ;;  %v113_v12 = vld [vmem:[%s207_s0 + $0x3] sm:$0x1]  }
   0x7   :  { %v114_v13 = vld [vmem:[%s207_s0 + $0x2] sm:$0x1]   ;;  %s143_s17 = smov 12   ;;  %s144_s18 = smov 8   ;;  %v115_v14 = vld [vmem:[%s207_s0 + $0x1] sm:$0x1]  }
   0x8   :  { %s145_s21 = smov 4   ;;  %v2_v15 = vld [vmem:[%s207_s0] sm:$0x1]   ;;  %vm27_vm4 = vcmask 425344   ;;  %vm33_vm5 = vcmask 392544   ;;  %vm39_vm6 = vcmask 359744  }
   0x9   :  { %4 = vst.msk [vmem:[#allocation0] sm:$0x1] %vm3_vm0, %v2_v15   ;;  %vm45_vm7 = vcmask 326944   ;;  %vm51_vm8 = vcmask 294144   ;;  %vm57_vm9 = vcmask 261344   ;;  %vm63_vm10 = vcmask 228544  }
   0xa   :  { %13 = vrot.lane.b32.xlu0 %v102_v3, %s134_s19  ;;  %25 = vrot.lane.b32.xlu1 %v104_v4, %s135_s20  ;;  %vm69_vm11 = vcmask 195744   ;;  %vm75_vm12 = vcmask 162944   ;;  %vm81_vm13 = vcmask 130144   ;;  %vm87_vm14 = vcmask 97344  }
   0xb   :  { %37 = vrot.lane.b32.xlu2 %v106_v5, %s136_s23  ;;  %vm93_vm15 = vcmask 64544  }
  0x12   :  { %43 = vrot.lane.b32.xlu0 %v107_v6, %s137_s28  ;;  %49 = vrot.lane.b32.xlu1 %v108_v7, %s138_s29 }
  0x13   :  { %55 = vrot.lane.b32.xlu2 %v109_v8, %s139_s3 }
  0x1a   :  { %61 = vrot.lane.b32.xlu0 %v110_v9, %s140_s8  ;;  %67 = vrot.lane.b32.xlu1 %v111_v10, %s141_s9 }
  0x1b   :  { %73 = vrot.lane.b32.xlu2 %v112_v11, %s142_s12 }
  0x22   :  { %79 = vrot.lane.b32.xlu0 %v113_v12, %s143_s17  ;;  %85 = vrot.lane.b32.xlu1 %v114_v13, %s144_s18 }
  0x23   :  { %91 = vrot.lane.b32.xlu2 %v115_v14, %s145_s21 }
  0x5d   :  { %v32_v16 = vpop.permute.xlu2 %31  }
  0x65   :  { %v38_v17 = vpop.permute.xlu2 %37  }
  0x6d   :  { %v56_v18 = vpop.permute.xlu2 %55  }
  0x74   :  { %v8_v19 = vpop.permute.xlu0 %7   ;;  %v20_v20 = vpop.permute.xlu1 %19  }
  0x75   :  { %10 = vst.msk [vmem:[#allocation0] sm:$0x1] %vm9_vm1, %v8_v19   ;;  %v74_v21 = vpop.permute.xlu2 %73  }
  0x7c   :  { %v14_v22 = vpop.permute.xlu0 %13   ;;  %v26_v23 = vpop.permute.xlu1 %25  }
  0x7d   :  { %16 = vst.msk [vmem:[#allocation0] sm:$0x1] %vm15_vm2, %v14_v22   ;;  %v92_v24 = vpop.permute.xlu2 %91  }
  0x7e   :  { %22 = vst.msk [vmem:[#allocation0] sm:$0x1] %vm21_vm3, %v20_v20  }
  0x7f   :  { %28 = vst.msk [vmem:[#allocation0] sm:$0x1] %vm27_vm4, %v26_v23  }
  0x80   :  { %34 = vst.msk [vmem:[#allocation0] sm:$0x1] %vm33_vm5, %v32_v16  }
  0x81   :  { %40 = vst.msk [vmem:[#allocation0] sm:$0x1] %vm39_vm6, %v38_v17  }
  0x84   :  { %v44_v25 = vpop.permute.xlu0 %43   ;;  %v50_v26 = vpop.permute.xlu1 %49  }
  0x85   :  { %46 = vst.msk [vmem:[#allocation0] sm:$0x1] %vm45_vm7, %v44_v25  }
  0x86   :  { %52 = vst.msk [vmem:[#allocation0] sm:$0x1] %vm51_vm8, %v50_v26  }
  0x87   :  { %58 = vst.msk [vmem:[#allocation0] sm:$0x1] %vm57_vm9, %v56_v18  }
  0x8c   :  { %v62_v27 = vpop.permute.xlu0 %61   ;;  %v68_v28 = vpop.permute.xlu1 %67  }
  0x8d   :  { %64 = vst.msk [vmem:[#allocation0] sm:$0x1] %vm63_vm10, %v62_v27  }
  0x8e   :  { %70 = vst.msk [vmem:[#allocation0] sm:$0x1] %vm69_vm11, %v68_v28  }
  0x8f   :  { %76 = vst.msk [vmem:[#allocation0] sm:$0x1] %vm75_vm12, %v74_v21  }
  0x94   :  { %v80_v29 = vpop.permute.xlu0 %79   ;;  %v86_v30 = vpop.permute.xlu1 %85  }
  0x95   :  { %82 = vst.msk [vmem:[#allocation0] sm:$0x1] %vm81_vm13, %v80_v29  }
  0x96   :  { %88 = vst.msk [vmem:[#allocation0] sm:$0x1] %vm87_vm14, %v86_v30  }
  0x97   :  { %94 = vst.msk [vmem:[#allocation0] sm:$0x1] %vm93_vm15, %v92_v24  }
  0x9e   :  { %v97_v31 = vld [vmem:[#allocation0] sm:$0x1] }
  0x9f   :  { %100 = vst [vmem:[%s208_s1] sm:$0x1] %v97_v31 }

// kernel: residual_block_forward.1
= control target key start
LH: loop header
LB: loop body
LE: loop exit
PB: predicated region body
PF: predicated region fallthrough
CT: control target
= control target key end

     0   :  { %s1525_s18 = smov 0   ;;  %s2185_s0 = inlined_call_operand.vmem [shape: f32[2,16,64], index: 0, kind: input, shape index: {}]   ;;  %s2186_s1 = inlined_call_operand.vmem [shape: f32[3,15,64], index: 1, kind: input, shape index: {}]   ;;  %s2187_s2 = inlined_call_operand.vmem [shape: f32[1,64], index: 2, kind: input, shape index: {}]   ;;  %s2188_s3 = inlined_call_operand.vmem [shape: f32[3,15,64], index: 3, kind: input, shape index: {}]   ;;  %s2189_s4 = inlined_call_operand.vmem [shape: f32[1,64], index: 4, kind: input, shape index: {}]   ;;  %s2190_s5 = inlined_call_operand.vmem [shape: f32[2,16,64], index: 5, kind: output, shape index: {}]  }
   0x1 LB: > { %s1428_s19 = sadd.s32 4294967295, %s1476_s18   ;;  %p1432_p0 = scmp.ge.s32.totalorder %s1476_s18, 1  ;;  %s1476_s18 = sphi %s1525_s18, %s15_s18  }
   0x2   : > { %p187_p1 = scmp.lt.s32.totalorder %s1476_s18, 3 }
   0x4   : > { %p188_p2 = pnand %p1432_p0, %p187_p1 }
   0x5   : > { %p215_p3 = scmp.lt.s32.totalorder (!%p188_p2), %s1428_s19, 1  ;;  %s1478_s24 = smov (!%p188_p2), 8  }
   0x6   : > { %191 = sbr.rel (%p188_p2) target bundleno = 985 (0x3d9), region = 40  ;;  %s1479_s25 = smov (!%p188_p2), 16  }
   0x7   : > { %s1480_s26 = smov (!%p188_p2), 126   ;;  %s1481_s27 = smov (!%p188_p2), 127  }
   0x8   : > { %s1482_s28 = smov (!%p188_p2), 125   ;;  %s1483_s29 = smov (!%p188_p2), 123  }
   0x9   : > { %s1484_s30 = smov (!%p188_p2), 124   ;;  %s1485_s6 = smov (!%p188_p2), 122  }
   0xa   : > { %s1486_s7 = smov (!%p188_p2), 120   ;;  %s1487_s8 = smov (!%p188_p2), 121  }
   0xb   : > { %s2192_s19 = smov (!%p215_p3, %s1428_s19), 1  ;;  %vm243_vm0 = vcmask 1040384   ;;  %vm274_vm1 = vcmask 31744   ;;  %vm278_vm2 = vcmask 64512   ;;  %vm282_vm3 = vcmask 588800   ;;  %s1488_s9 = smov 119  }
   0xc   : > { %s1439_s20 = sshll.u32 %s2192_s19, 4  ;;  %vm286_vm4 = vcmask 621568   ;;  %s1489_s10 = smov 117   ;;  %vm459_vm5 = vcmask 1046528   ;;  %vm630_vm6 = vcmask 1045504   ;;  %v227_v61 = vld [vmem:[%s2186_s1] sm:$0xff] }
   0xd   : > { %s1541_s23 = scalar_lea.vmem %s2185_s0, %s1439_s20  ;;  %s1490_s11 = smov 118   ;;  %v303_v62 = vperm.slane %v227_v61, 1  ;;  %v290_v63 = vperm.slane %v227_v61, 0  ;;  %vm1370_vm7 = vcmask 523264  }
   0xe   : > { %v226_v0 = vld [vmem:[%s1541_s23 + $0x8] sm:$0xff]  ;;  %v225_v1 = vld [vmem:[%s1541_s23] sm:$0xff]  ;;  %s1491_s12 = smov 116   ;;  %s1492_s13 = smov 114  }
   0xf   : > { %v245_v2 = vrot.slane %v226_v0, 7  ;;  %v250_v3 = vrot.slane %v226_v0, 5  ;;  %v240_v4 = vrot.slane %v225_v1, 1  ;;  %v244_v5 = vrot.slane %v225_v1, 7  ;;  %s1493_s14 = smov 115   ;;  %s1494_s15 = smov 113  }
  0x11   : > { %v1546_v6 = vsel %vm243_vm0, %v245_v2, %v250_v3  ;;  %v252_v7 = vsel %vm243_vm0, %v240_v4, %v244_v5  ;;  %v246_v8 = vsel %vm243_vm0, %v244_v5, %v245_v2  ;;  %v314_v3 = vperm.slane %v227_v61, 2 }
  0x12   : > { %260 = vrot.lane.b32.xlu1 %v1546_v6, %s1478_s24  ;;  %256 = vrot.lane.b32.xlu0 %v252_v7, %s1478_s24  ;;  %v275_v11 = vsel %vm274_vm1, 0.0, %v252_v7  ;;  %v276_v12 = vsel %vm274_vm1, 0.0, %v246_v8  ;;  %v277_v22 = vsel %vm274_vm1, 0.0, %v1546_v6  ;;  %v325_v5 = vperm.slane %v227_v61, 3 }
  0x13   : > { %267 = vrot.lane.b32.xlu2 %v246_v8, %s1479_s25 }
  0x1a   : > { %265 = vrot.lane.b32.xlu1 %v252_v7, %s1479_s25  ;;  %258 = vrot.lane.b32.xlu0 %v246_v8, %s1478_s24 }
  0x1b   : > { %269 = vrot.lane.b32.xlu2 %v1546_v6, %s1479_s25 }
  0x6d   : > { %v268_v16 = vpop.permute.xlu2 %267 }
  0x75   : > { %v270_v24 = vpop.permute.xlu2 %269 }
  0x84   : > { %v261_v9 = vpop.permute.xlu1 %260  ;;  %v257_v10 = vpop.permute.xlu0 %256 }
  0x85   : > { %v279_v13 = vsel %vm278_vm2, %v275_v11, %v257_v10  ;;  %v281_v23 = vsel %vm278_vm2, %v277_v22, %v261_v9  ;;  %v336_v9 = vperm.slane %v227_v61, 4 }
  0x86   : > { %v285_v25 = vsel %vm282_vm3, %v281_v23, %v270_v24  ;;  %v358_v23 = vperm.slane %v227_v61, 6 }
  0x87   : > { %v1635_v26 = vsel %vm286_vm4, %v285_v25, 0.0 }
  0x88   : > { %v463_v29 = vrot.slane %v1635_v26, 1  ;;  %v634_v55 = vrot.slane %v1635_v26, 2 }
  0x8c   : > { %v266_v14 = vpop.permute.xlu1 %265  ;;  %v259_v15 = vpop.permute.xlu0 %258 }
  0x8d   : > { %v283_v17 = vsel %vm282_vm3, %v279_v13, %v266_v14  ;;  %v280_v18 = vsel %vm278_vm2, %v276_v12, %v259_v15 }
  0x8e   : > { %v1564_v19 = vsel %vm286_vm4, %v283_v17, 0.0  ;;  %v284_v20 = vsel %vm282_vm3, %v280_v18, %v268_v16 }
  0x8f   : > { %v1568_v21 = vsel %vm286_vm4, %v284_v20, 0.0  ;;  %304 = vrot.lane.b32.xlu2 %v1564_v19, %s1480_s26  ;;  %293 = vrot.lane.b32.xlu0 %v1564_v19, %s1481_s27  ;;  %v460_v27 = vrot.slane %v1564_v19, 1  ;;  %v631_v53 = vrot.slane %v1564_v19, 2  ;;  %v347_v20 = vperm.slane %v227_v61, 5 }
  0x90   : > { %295 = vrot.lane.b32.xlu1 %v1568_v21, %s1481_s27  ;;  %v461_v28 = vrot.slane %v1568_v21, 1  ;;  %v632_v54 = vrot.slane %v1568_v21, 2 }
  0x92   : > { %v462_v30 = vsel %vm459_vm5, %v460_v27, %v461_v28  ;;  %v464_v31 = vsel %vm459_vm5, %v461_v28, %v463_v29  ;;  %v1700_v56 = vsel %vm630_vm6, %v631_v53, %v632_v54  ;;  %v1707_v57 = vsel %vm630_vm6, %v632_v54, %v634_v55 }
  0x93   : > { %v369_v27 = vperm.slane %v227_v61, 7 }
  0x97   : > { %317 = vrot.lane.b32.xlu2 %v1568_v21, %s1482_s28  ;;  %306 = vrot.lane.b32.xlu0 %v1568_v21, %s1480_s26 }
  0x98   : > { %315 = vrot.lane.b32.xlu1 %v1564_v19, %s1482_s28 }
  0x9f   : > { %337 = vrot.lane.b32.xlu2 %v1564_v19, %s1483_s29  ;;  %326 = vrot.lane.b32.xlu0 %v1564_v19, %s1484_s30 }
  0xa0   : > { %328 = vrot.lane.b32.xlu1 %v1568_v21, %s1484_s30 }
  0xa7   : > { %350 = vrot.lane.b32.xlu2 %v1568_v21, %s1485_s6  ;;  %339 = vrot.lane.b32.xlu0 %v1568_v21, %s1483_s29 }
  0xa8   : > { %348 = vrot.lane.b32.xlu1 %v1564_v19, %s1485_s6 }
  0xaf   : > { %370 = vrot.lane.b32.xlu2 %v1564_v19, %s1486_s7  ;;  %359 = vrot.lane.b32.xlu0 %v1564_v19, %s1487_s8 }
  0xb0   : > { %361 = vrot.lane.b32.xlu1 %v1568_v21, %s1487_s8 }
  0xb7   : > { %383 = vrot.lane.b32.xlu2 %v1568_v21, %s1488_s9  ;;  %372 = vrot.lane.b32.xlu0 %v1568_v21, %s1486_s7 }
  0xb8   : > { %381 = vrot.lane.b32.xlu1 %v1564_v19, %s1488_s9 }
  0xbf   : > { %403 = vrot.lane.b32.xlu2 %v1564_v19, %s1489_s10  ;;  %392 = vrot.lane.b32.xlu0 %v1564_v19, %s1490_s11 }
  0xc0   : > { %394 = vrot.lane.b32.xlu1 %v1568_v21, %s1490_s11 }
  0xc7   : > { %416 = vrot.lane.b32.xlu2 %v1568_v21, %s1491_s12  ;;  %405 = vrot.lane.b32.xlu0 %v1568_v21, %s1489_s10 }
  0xc8   : > { %414 = vrot.lane.b32.xlu1 %v1564_v19, %s1491_s12 }
  0xcf   : > { %436 = vrot.lane.b32.xlu2 %v1564_v19, %s1492_s13  ;;  %425 = vrot.lane.b32.xlu0 %v1564_v19, %s1493_s14 }
  0xd0   : > { %427 = vrot.lane.b32.xlu1 %v1568_v21, %s1493_s14 }
  0xd7   : > { %449 = vrot.lane.b32.xlu2 %v1568_v21, %s1494_s15  ;;  %438 = vrot.lane.b32.xlu0 %v1568_v21, %s1492_s13 }
  0xd8   : > { %447 = vrot.lane.b32.xlu1 %v1564_v19, %s1494_s15 }
  0xdf   : > { %476 = vrot.lane.b32.xlu2 %v462_v30, %s1480_s26  ;;  %465 = vrot.lane.b32.xlu0 %v462_v30, %s1481_s27 }
  0xe0   : > { %467 = vrot.lane.b32.xlu1 %v464_v31, %s1481_s27 }
  0xe7   : > { %489 = vrot.lane.b32.xlu2 %v464_v31, %s1482_s28  ;;  %478 = vrot.lane.b32.xlu0 %v464_v31, %s1480_s26 }
  0xe8   : > { %487 = vrot.lane.b32.xlu1 %v462_v30, %s1482_s28 }
  0xe9   : > { %v1648_v32 = vpop.permute.xlu2 %304 }
  0xea   : > { %v310_v10 = vmul.f32 %v1648_v32, %v303_v62  ;;  %v1746_v32 = vld [vmem:[%s2186_s1 + $0x8] sm:$0x7f] }
  0xeb   : > { %v402_v54 = vperm.slane %v1746_v32, 2 }
  0xef   : > { %509 = vrot.lane.b32.xlu2 %v462_v30, %s1483_s29  ;;  %498 = vrot.lane.b32.xlu0 %v462_v30, %s1484_s30 }
  0xf0   : > { %500 = vrot.lane.b32.xlu1 %v464_v31, %s1484_s30 }
  0xf1   : > { %v1653_v33 = vpop.permute.xlu2 %317 }
  0xf2   : > { %v322_v11 = vmul.f32 %v1653_v33, %v314_v3 }
  0xf7   : > { %522 = vrot.lane.b32.xlu2 %v464_v31, %s1485_s6  ;;  %511 = vrot.lane.b32.xlu0 %v464_v31, %s1483_s29 }
  0xf8   : > { %520 = vrot.lane.b32.xlu1 %v462_v30, %s1485_s6 }
  0xf9   : > { %v1658_v34 = vpop.permute.xlu2 %337 }
  0xfa   : > { %v343_v28 = vmul.f32 %v1658_v34, %v336_v9 }
  0xff   : > { %542 = vrot.lane.b32.xlu2 %v462_v30, %s1486_s7  ;;  %531 = vrot.lane.b32.xlu0 %v462_v30, %s1487_s8 }
 0x100   : > { %533 = vrot.lane.b32.xlu1 %v464_v31, %s1487_s8 }
 0x101   : > { %v1663_v35 = vpop.permute.xlu2 %350  ;;  %v294_v36 = vpop.permute.xlu0 %293 }
 0x102   : > { %v296_v37 = vpop.permute.xlu1 %295  ;;  %v299_v7 = vmul.f32 %v294_v36, %v290_v63  ;;  %v355_v29 = vmul.f32 %v1663_v35, %v347_v20 }
 0x103   : > { %v300_v4 = vmul.f32 %v296_v37, %v290_v63 }
 0x104   : > { %v312_v14 = vadd.f32 %v310_v10, %v299_v7  ;;  %v435_v10 = vperm.slane %v1746_v32, 5 }
 0x107   : > { %555 = vrot.lane.b32.xlu2 %v464_v31, %s1488_s9  ;;  %544 = vrot.lane.b32.xlu0 %v464_v31, %s1486_s7 }
 0x108   : > { %553 = vrot.lane.b32.xlu1 %v462_v30, %s1488_s9 }
 0x109   : > { %v1668_v38 = vpop.permute.xlu2 %370  ;;  %v307_v39 = vpop.permute.xlu0 %306 }
 0x10a   : > { %v316_v40 = vpop.permute.xlu1 %315  ;;  %v311_v0 = vmul.f32 %v307_v39, %v303_v62 }
 0x10b   : > { %v321_v12 = vmul.f32 %v316_v40, %v314_v3  ;;  %v380_v40 = vperm.slane %v1746_v32, 0 }
 0x10c   : > { %v313_v8 = vadd.f32 %v311_v0, %v300_v4 }
 0x10d   : > { %v323_v21 = vadd.f32 %v321_v12, %v312_v14 }
 0x10e   : > { %v324_v16 = vadd.f32 %v322_v11, %v313_v8 }
 0x10f   : > { %575 = vrot.lane.b32.xlu2 %v462_v30, %s1489_s10  ;;  %564 = vrot.lane.b32.xlu0 %v462_v30, %s1490_s11 }
 0x110   : > { %566 = vrot.lane.b32.xlu1 %v464_v31, %s1490_s11 }
 0x111   : > { %v1673_v41 = vpop.permute.xlu2 %383  ;;  %v327_v42 = vpop.permute.xlu0 %326 }
 0x112   : > { %v329_v43 = vpop.permute.xlu1 %328  ;;  %v332_v15 = vmul.f32 %v327_v42, %v325_v5 }
 0x113   : > { %v333_v13 = vmul.f32 %v329_v43, %v325_v5  ;;  %v424_v5 = vperm.slane %v1746_v32, 4 }
 0x114   : > { %v334_v25 = vadd.f32 %v332_v15, %v323_v21 }
 0x115   : > { %v335_v22 = vadd.f32 %v333_v13, %v324_v16 }
 0x116   : > { %v345_v33 = vadd.f32 %v343_v28, %v334_v25 }
 0x117   : > { %588 = vrot.lane.b32.xlu2 %v464_v31, %s1491_s12  ;;  %577 = vrot.lane.b32.xlu0 %v464_v31, %s1489_s10 }
 0x118   : > { %586 = vrot.lane.b32.xlu1 %v462_v30, %s1491_s12 }
 0x119   : > { %v1678_v44 = vpop.permute.xlu2 %403  ;;  %v340_v45 = vpop.permute.xlu0 %339 }
 0x11a   : > { %v1680_v46 = vpop.permute.xlu1 %348  ;;  %v344_v17 = vmul.f32 %v340_v45, %v336_v9  ;;  %v391_v45 = vperm.slane %v1746_v32, 1 }
 0x11c   : > { %v346_v26 = vadd.f32 %v344_v17, %v335_v22  ;;  %v446_v17 = vperm.slane %v1746_v32, 6 }
 0x11e   : > { %v357_v34 = vadd.f32 %v355_v29, %v346_v26 }
 0x11f   : > { %608 = vrot.lane.b32.xlu2 %v462_v30, %s1492_s13  ;;  %597 = vrot.lane.b32.xlu0 %v462_v30, %s1493_s14 }
 0x120   : > { %599 = vrot.lane.b32.xlu1 %v464_v31, %s1493_s14 }
 0x121   : > { %v1685_v47 = vpop.permute.xlu2 %416  ;;  %v1687_v48 = vpop.permute.xlu0 %359 }
 0x122   : > { %v362_v49 = vpop.permute.xlu1 %361  ;;  %v365_v36 = vmul.f32 %v1687_v48, %v358_v23  ;;  %v376_v48 = vmul.f32 %v1668_v38, %v369_v27 }
 0x127   : > { %621 = vrot.lane.b32.xlu2 %v464_v31, %s1494_s15  ;;  %610 = vrot.lane.b32.xlu0 %v464_v31, %s1492_s13  ;;  %v366_v31 = vmul.f32 %v362_v49, %v358_v23 }
 0x128   : > { %619 = vrot.lane.b32.xlu1 %v462_v30, %s1494_s15  ;;  %v354_v30 = vmul.f32 %v1680_v46, %v347_v20 }
 0x129   : > { %v1692_v50 = vpop.permute.xlu2 %436  ;;  %v373_v51 = vpop.permute.xlu0 %372  ;;  %v368_v43 = vadd.f32 %v366_v31, %v357_v34 }
 0x12a   : > { %v1694_v52 = vpop.permute.xlu1 %381  ;;  %v377_v37 = vmul.f32 %v373_v51, %v369_v27  ;;  %v356_v42 = vadd.f32 %v354_v30, %v345_v33  ;;  %v388_v51 = vmul.f32 %v1673_v41, %v380_v40  ;;  %v442_v26 = vmul.f32 %v1692_v50, %v435_v10 }
 0x12b   : > { %v387_v55 = vmul.f32 %v1694_v52, %v380_v40  ;;  %v413_v52 = vperm.slane %v1746_v32, 3 }
 0x12c   : > { %v367_v49 = vadd.f32 %v365_v36, %v356_v42  ;;  %v379_v53 = vadd.f32 %v377_v37, %v368_v43 }
 0x12e   : > { %v378_v62 = vadd.f32 %v376_v48, %v367_v49  ;;  %v390_v0 = vadd.f32 %v388_v51, %v379_v53 }
 0x12f   : > { %647 = vrot.lane.b32.xlu2 %v1700_v56, %s1480_s26  ;;  %636 = vrot.lane.b32.xlu0 %v1700_v56, %s1481_s27 }
 0x130   : > { %638 = vrot.lane.b32.xlu1 %v1707_v57, %s1481_s27 }
 0x131   : > { %v1711_v58 = vpop.permute.xlu2 %449  ;;  %v1713_v59 = vpop.permute.xlu0 %392 }
 0x132   : > { %v1715_v60 = vpop.permute.xlu1 %394  ;;  %v398_v63 = vmul.f32 %v1713_v59, %v391_v45  ;;  %v409_v59 = vmul.f32 %v1678_v44, %v402_v54  ;;  %v1788_v44 = vld [vmem:[%s2186_s1 + $0x10] sm:$0xff]  ;;  %v454_v27 = vmul.f32 %v1711_v58, %v446_v17 }
 0x133   : > { %v399_v61 = vmul.f32 %v1715_v60, %v391_v45  ;;  %v389_v60 = vadd.f32 %v387_v55, %v378_v62  ;;  %v457_v22 = vperm.slane %v1788_v44, 0  ;;  %v475_v25 = vperm.slane %v1788_v44, 1 }
 0x134   : > { %v486_v50 = vperm.slane %v1788_v44, 2  ;;  %v519_v48 = vperm.slane %v1788_v44, 5 }
 0x135   : > { %v401_v4 = vadd.f32 %v399_v61, %v390_v0  ;;  %v400_v8 = vadd.f32 %v398_v63, %v389_v60 }
 0x137   : > { %660 = vrot.lane.b32.xlu2 %v1707_v57, %s1482_s28  ;;  %649 = vrot.lane.b32.xlu0 %v1707_v57, %s1480_s26  ;;  %v411_v13 = vadd.f32 %v409_v59, %v400_v8 }
 0x138   : > { %658 = vrot.lane.b32.xlu1 %v1700_v56, %s1482_s28 }
 0x139   : > { %v406_v1 = vpop.permute.xlu0 %405  ;;  %v1726_v2 = vpop.permute.xlu2 %476 }
 0x13a   : > { %v1728_v6 = vpop.permute.xlu1 %414  ;;  %v410_v3 = vmul.f32 %v406_v1, %v402_v54  ;;  %v421_v1 = vmul.f32 %v1685_v47, %v413_v52  ;;  %v482_v45 = vmul.f32 %v1726_v2, %v475_v25  ;;  %v508_v54 = vperm.slane %v1788_v44, 4 }
 0x13b   : > { %v420_v11 = vmul.f32 %v1728_v6, %v413_v52 }
 0x13c   : > { %v412_v9 = vadd.f32 %v410_v3, %v401_v4 }
 0x13d   : > { %v422_v20 = vadd.f32 %v420_v11, %v411_v13 }
 0x13e   : > { %v423_v15 = vadd.f32 %v421_v1, %v412_v9  ;;  %v541_v9 = vperm.slane %v1788_v44, 7 }
 0x13f   : > { %680 = vrot.lane.b32.xlu2 %v1700_v56, %s1483_s29  ;;  %669 = vrot.lane.b32.xlu0 %v1700_v56, %s1484_s30 }
 0x140   : > { %671 = vrot.lane.b32.xlu1 %v1707_v57, %s1484_s30 }
 0x141   : > { %v426_v18 = vpop.permute.xlu0 %425  ;;  %v1738_v19 = vpop.permute.xlu2 %489 }
 0x142   : > { %v428_v24 = vpop.permute.xlu1 %427  ;;  %v431_v14 = vmul.f32 %v426_v18, %v424_v5 }
 0x143   : > { %v432_v12 = vmul.f32 %v428_v24, %v424_v5 }
 0x144   : > { %v433_v23 = vadd.f32 %v431_v14, %v422_v20 }
 0x145   : > { %v434_v21 = vadd.f32 %v432_v12, %v423_v15  ;;  %v1829_v15 = vld [vmem:[%s2186_s1 + $0x18] sm:$0x7f] }
 0x146   : > { %v444_v30 = vadd.f32 %v442_v26, %v433_v23 }
 0x147   : > { %693 = vrot.lane.b32.xlu2 %v1707_v57, %s1485_s6  ;;  %682 = vrot.lane.b32.xlu0 %v1707_v57, %s1483_s29 }
 0x148   : > { %691 = vrot.lane.b32.xlu1 %v1700_v56, %s1485_s6 }
 0x149   : > { %v439_v35 = vpop.permute.xlu0 %438  ;;  %v1755_v39 = vpop.permute.xlu2 %509 }
 0x14a   : > { %v448_v46 = vpop.permute.xlu1 %447  ;;  %v443_v16 = vmul.f32 %v439_v35, %v435_v10  ;;  %v497_v35 = vperm.slane %v1788_v44, 3  ;;  %v515_v4 = vmul.f32 %v1755_v39, %v508_v54 }
 0x14b   : > { %v453_v28 = vmul.f32 %v448_v46, %v446_v17  ;;  %v494_v46 = vmul.f32 %v1738_v19, %v486_v50 }
 0x14c   : > { %v445_v24 = vadd.f32 %v443_v16, %v434_v21 }
 0x14d   : > { %v455_v58 = vadd.f32 %v453_v28, %v444_v30 }
 0x14e   : > { %v456_v32 = vadd.f32 %v454_v27, %v445_v24  ;;  %v574_v27 = vperm.slane %v1829_v15, 2 }
 0x14f   : > { %713 = vrot.lane.b32.xlu2 %v1700_v56, %s1486_s7  ;;  %702 = vrot.lane.b32.xlu0 %v1700_v56, %s1487_s8 }
 0x150   : > { %704 = vrot.lane.b32.xlu1 %v1707_v57, %s1487_s8 }
 0x151   : > { %v1771_v38 = vpop.permute.xlu2 %522  ;;  %v466_v41 = vpop.permute.xlu0 %465 }
 0x152   : > { %v468_v7 = vpop.permute.xlu1 %467  ;;  %v471_v31 = vmul.f32 %v466_v41, %v457_v22  ;;  %v527_v41 = vmul.f32 %v1771_v38, %v519_v48 }
 0x153   : > { %v472_v29 = vmul.f32 %v468_v7, %v457_v22  ;;  %v530_v7 = vperm.slane %v1788_v44, 6 }
 0x154   : > { %v473_v42 = vadd.f32 %v471_v31, %v455_v58 }
 0x155   : > { %v474_v37 = vadd.f32 %v472_v29, %v456_v32 }
 0x156   : > { %v484_v51 = vadd.f32 %v482_v45, %v473_v42 }
 0x157   : > { %726 = vrot.lane.b32.xlu2 %v1707_v57, %s1488_s9  ;;  %715 = vrot.lane.b32.xlu0 %v1707_v57, %s1486_s7 }
 0x158   : > { %724 = vrot.lane.b32.xlu1 %v1700_v56, %s1488_s9 }
 0x159   : > { %v1790_v47 = vpop.permute.xlu2 %542  ;;  %v479_v6 = vpop.permute.xlu0 %478 }
 0x15a   : > { %v488_v18 = vpop.permute.xlu1 %487  ;;  %v483_v33 = vmul.f32 %v479_v6, %v475_v25  ;;  %v548_v13 = vmul.f32 %v1790_v47, %v541_v9  ;;  %v552_v6 = vperm.slane %v1829_v15, 0  ;;  %v563_v25 = vperm.slane %v1829_v15, 1 }
 0x15b   : > { %v493_v49 = vmul.f32 %v488_v18, %v486_v50 }
 0x15c   : > { %v485_v43 = vadd.f32 %v483_v33, %v474_v37 }
 0x15d   : > { %v495_v62 = vadd.f32 %v493_v49, %v484_v51 }
 0x15e   : > { %v496_v61 = vadd.f32 %v494_v46, %v485_v43 }
 0x15f   : > { %746 = vrot.lane.b32.xlu2 %v1700_v56, %s1489_s10  ;;  %735 = vrot.lane.b32.xlu0 %v1700_v56, %s1490_s11 }
 0x160   : > { %737 = vrot.lane.b32.xlu1 %v1707_v57, %s1490_s11 }
 0x161   : > { %v556_v36 = vpop.permute.xlu2 %555  ;;  %v499_v34 = vpop.permute.xlu0 %498 }
 0x162   : > { %v501_v40 = vpop.permute.xlu1 %500  ;;  %v504_v55 = vmul.f32 %v499_v34, %v497_v35  ;;  %v560_v18 = vmul.f32 %v556_v36, %v552_v6 }
 0x163   : > { %v505_v53 = vmul.f32 %v501_v40, %v497_v35 }
 0x164   : > { %v506_v52 = vadd.f32 %v504_v55, %v495_v62 }
 0x165   : > { %v507_v63 = vadd.f32 %v505_v53, %v496_v61  ;;  %v585_v61 = vperm.slane %v1829_v15, 3 }
 0x166   : > { %v517_v10 = vadd.f32 %v515_v4, %v506_v52 }
 0x167   : > { %759 = vrot.lane.b32.xlu2 %v1707_v57, %s1491_s12  ;;  %748 = vrot.lane.b32.xlu0 %v1707_v57, %s1489_s10 }
 0x168   : > { %757 = vrot.lane.b32.xlu1 %v1700_v56, %s1491_s12 }
 0x169   : > { %v576_v2 = vpop.permute.xlu2 %575  ;;  %v512_v19 = vpop.permute.xlu0 %511 }
 0x16a   : > { %v516_v0 = vmul.f32 %v512_v19, %v508_v54  ;;  %v521_v3 = vpop.permute.xlu1 %520  ;;  %v581_v31 = vmul.f32 %v576_v2, %v574_v27  ;;  %v596_v2 = vperm.slane %v1829_v15, 4 }
 0x16b   : > { %v526_v5 = vmul.f32 %v521_v3, %v519_v48 }
 0x16c   : > { %v518_v60 = vadd.f32 %v516_v0, %v507_v63 }
 0x16d   : > { %v528_v1 = vadd.f32 %v526_v5, %v517_v10 }
 0x16e   : > { %v529_v8 = vadd.f32 %v527_v41, %v518_v60  ;;  %v607_v60 = vperm.slane %v1829_v15, 5 }
 0x16f   : > { %779 = vrot.lane.b32.xlu2 %v1700_v56, %s1492_s13  ;;  %768 = vrot.lane.b32.xlu0 %v1700_v56, %s1493_s14 }
 0x170   : > { %770 = vrot.lane.b32.xlu1 %v1707_v57, %s1493_s14 }
 0x171   : > { %v589_v38 = vpop.permute.xlu2 %588  ;;  %v532_v59 = vpop.permute.xlu0 %531 }
 0x172   : > { %v537_v39 = vmul.f32 %v532_v59, %v530_v7  ;;  %v534_v11 = vpop.permute.xlu1 %533  ;;  %v593_v5 = vmul.f32 %v589_v38, %v585_v61 }
 0x173   : > { %v538_v12 = vmul.f32 %v534_v11, %v530_v7  ;;  %v1850_v7 = vld [vmem:[%s2186_s1 + $0x20] sm:$0xff] }
 0x174   : > { %v539_v14 = vadd.f32 %v537_v39, %v528_v1  ;;  %v629_v59 = vperm.slane %v1850_v7, 0 }
 0x175   : > { %v540_v16 = vadd.f32 %v538_v12, %v529_v8 }
 0x176   : > { %v550_v44 = vadd.f32 %v548_v13, %v539_v14 }
 0x177   : > { %792 = vrot.lane.b32.xlu2 %v1707_v57, %s1494_s15  ;;  %781 = vrot.lane.b32.xlu0 %v1707_v57, %s1492_s13 }
 0x178   : > { %790 = vrot.lane.b32.xlu1 %v1700_v56, %s1494_s15 }
 0x179   : > { %v545_v47 = vpop.permute.xlu0 %544  ;;  %v609_v21 = vpop.permute.xlu2 %608 }
 0x17a   : > { %v549_v17 = vmul.f32 %v545_v47, %v541_v9  ;;  %v554_v20 = vpop.permute.xlu1 %553  ;;  %v618_v9 = vperm.slane %v1829_v15, 6  ;;  %v614_v11 = vmul.f32 %v609_v21, %v607_v60 }
 0x17b   : > { %v559_v22 = vmul.f32 %v554_v20, %v552_v6 }
 0x17c   : > { %v551_v23 = vadd.f32 %v549_v17, %v540_v16  ;;  %v646_v17 = vperm.slane %v1850_v7, 1 }
 0x17d   : > { %v561_v24 = vadd.f32 %v559_v22, %v550_v44 }
 0x17e   : > { %v562_v26 = vadd.f32 %v560_v18, %v551_v23  ;;  %v657_v18 = vperm.slane %v1850_v7, 2 }
 0x181   : > { %v565_v28 = vpop.permute.xlu0 %564  ;;  %v622_v56 = vpop.permute.xlu2 %621 }
 0x182   : > { %v570_v57 = vmul.f32 %v565_v28, %v563_v25  ;;  %v567_v29 = vpop.permute.xlu1 %566  ;;  %v626_v22 = vmul.f32 %v622_v56, %v618_v9 }
 0x183   : > { %v571_v30 = vmul.f32 %v567_v29, %v563_v25 }
 0x184   : > { %v572_v32 = vadd.f32 %v570_v57, %v561_v24  ;;  %v668_v24 = vperm.slane %v1850_v7, 3 }
 0x185   : > { %v573_v33 = vadd.f32 %v571_v30, %v562_v26 }
 0x186   : > { %v583_v34 = vadd.f32 %v581_v31, %v572_v32 }
 0x189   : > { %v578_v50 = vpop.permute.xlu0 %577  ;;  %v648_v37 = vpop.permute.xlu2 %647 }
 0x18a   : > { %v587_v58 = vpop.permute.xlu1 %586  ;;  %v582_v62 = vmul.f32 %v578_v50, %v574_v27  ;;  %v653_v26 = vmul.f32 %v648_v37, %v646_v17 }
 0x18b   : > { %v592_v63 = vmul.f32 %v587_v58, %v585_v61 }
 0x18c   : > { %v584_v52 = vadd.f32 %v582_v62, %v573_v33  ;;  %v232_v62 = vld [vmem:[%s2186_s1 + $0x28] sm:$0x7f] }
 0x18d   : > { %v594_v4 = vadd.f32 %v592_v63, %v583_v34  ;;  %v679_v34 = vperm.slane %v1850_v7, 4 }
 0x18e   : > { %v595_v1 = vadd.f32 %v593_v5, %v584_v52 }
 0x191   : > { %v598_v36 = vpop.permute.xlu0 %597  ;;  %v661_v40 = vpop.permute.xlu2 %660 }
 0x192   : > { %v600_v35 = vpop.permute.xlu1 %599  ;;  %v603_v41 = vmul.f32 %v598_v36, %v596_v2  ;;  %v665_v50 = vmul.f32 %v661_v40, %v657_v18  ;;  %v690_v36 = vperm.slane %v1850_v7, 5 }
 0x193   : > { %v604_v8 = vmul.f32 %v600_v35, %v596_v2 }
 0x194   : > { %v605_v10 = vadd.f32 %v603_v41, %v594_v4 }
 0x195   : > { %v606_v16 = vadd.f32 %v604_v8, %v595_v1 }
 0x196   : > { %v616_v44 = vadd.f32 %v614_v11, %v605_v10 }
 0x199   : > { %v611_v42 = vpop.permute.xlu0 %610  ;;  %v681_v49 = vpop.permute.xlu2 %680 }
 0x19a   : > { %v620_v43 = vpop.permute.xlu1 %619  ;;  %v615_v39 = vmul.f32 %v611_v42, %v607_v60  ;;  %v701_v42 = vperm.slane %v1850_v7, 6 }
 0x19b   : > { %v625_v12 = vmul.f32 %v620_v43, %v618_v9 }
 0x19c   : > { %v617_v47 = vadd.f32 %v615_v39, %v606_v16 }
 0x19d   : > { %v627_v20 = vadd.f32 %v625_v12, %v616_v44 }
 0x19e   : > { %v628_v21 = vadd.f32 %v626_v22, %v617_v47  ;;  %v767_v47 = vperm.slane %v232_v62, 4 }
 0x1a1   : > { %v637_v45 = vpop.permute.xlu0 %636  ;;  %v1840_v48 = vpop.permute.xlu2 %693 }
 0x1a2   : > { %v639_v46 = vpop.permute.xlu1 %638  ;;  %v642_v6 = vmul.f32 %v637_v45, %v629_v59  ;;  %v686_v45 = vmul.f32 %v681_v49, %v679_v34  ;;  %v698_v52 = vmul.f32 %v1840_v48, %v690_v36 }
 0x1a3   : > { %v643_v15 = vmul.f32 %v639_v46, %v629_v59 }
 0x1a4   : > { %v644_v23 = vadd.f32 %v642_v6, %v627_v20 }
 0x1a5   : > { %v645_v57 = vadd.f32 %v643_v15, %v628_v21 }
 0x1a6   : > { %v655_v30 = vadd.f32 %v653_v26, %v644_v23  ;;  %v778_v26 = vperm.slane %v232_v62, 5 }
 0x1a9   : > { %v650_v53 = vpop.permute.xlu0 %649  ;;  %v1844_v19 = vpop.permute.xlu2 %713 }
 0x1aa   : > { %v659_v54 = vpop.permute.xlu1 %658  ;;  %v654_v25 = vmul.f32 %v650_v53, %v646_v17 }
 0x1ab   : > { %v664_v27 = vmul.f32 %v659_v54, %v657_v18 }
 0x1ac   : > { %v656_v33 = vadd.f32 %v654_v25, %v645_v57 }
 0x1ad   : > { %v666_v56 = vadd.f32 %v664_v27, %v655_v30 }
 0x1ae   : > { %v667_v43 = vadd.f32 %v665_v50, %v656_v33 }
 0x1b1   : > { %v670_v51 = vpop.permute.xlu0 %669  ;;  %v1854_v13 = vpop.permute.xlu2 %726 }
 0x1b2   : > { %v672_v55 = vpop.permute.xlu1 %671  ;;  %v675_v31 = vmul.f32 %v670_v51, %v668_v24 }
 0x1b3   : > { %v676_v58 = vmul.f32 %v672_v55, %v668_v24  ;;  %v712_v55 = vperm.slane %v1850_v7, 7  ;;  %v745_v7 = vperm.slane %v232_v62, 2 }
 0x1b4   : > { %v677_v35 = vadd.f32 %v675_v31, %v666_v56 }
 0x1b5   : > { %v678_v54 = vadd.f32 %v676_v58, %v667_v43  ;;  %v719_v8 = vmul.f32 %v1844_v19, %v712_v55  ;;  %v1466_v58 = vld [vmem:[%s2187_s2] ss:$0 sm:$0xff] }
 0x1b6   : > { %v688_v51 = vadd.f32 %v686_v45, %v677_v35 }
 0x1b9   : > { %v683_v0 = vpop.permute.xlu0 %682  ;;  %v747_v32 = vpop.permute.xlu2 %746 }
 0x1ba   : > { %v692_v3 = vpop.permute.xlu1 %691  ;;  %v687_v37 = vmul.f32 %v683_v0, %v679_v34  ;;  %v723_v0 = vperm.slane %v232_v62, 0  ;;  %v752_v22 = vmul.f32 %v747_v32, %v745_v7 }
 0x1bb   : > { %v697_v46 = vmul.f32 %v692_v3, %v690_v36  ;;  %v734_v3 = vperm.slane %v232_v62, 1 }
 0x1bc   : > { %v689_v40 = vadd.f32 %v687_v37, %v678_v54  ;;  %v731_v16 = vmul.f32 %v1854_v13, %v723_v0 }
 0x1bd   : > { %v699_v63 = vadd.f32 %v697_v46, %v688_v51 }
 0x1be   : > { %v700_v4 = vadd.f32 %v698_v52, %v689_v40 }
 0x1c1   : > { %v703_v14 = vpop.permute.xlu0 %702  ;;  %v760_v41 = vpop.permute.xlu2 %759 }
 0x1c2   : > { %v705_v38 = vpop.permute.xlu1 %704  ;;  %v708_v2 = vmul.f32 %v703_v14, %v701_v42 }
 0x1c3   : > { %v709_v60 = vmul.f32 %v705_v38, %v701_v42  ;;  %v756_v38 = vperm.slane %v232_v62, 3 }
 0x1c4   : > { %v710_v49 = vadd.f32 %v708_v2, %v699_v63 }
 0x1c5   : > { %v711_v59 = vadd.f32 %v709_v60, %v700_v4 }
 0x1c6   : > { %v721_v39 = vadd.f32 %v719_v8, %v710_v49 }
 0x1c9   : > { %v716_v28 = vpop.permute.xlu0 %715  ;;  %v780_v44 = vpop.permute.xlu2 %779 }
 0x1ca   : > { %v725_v29 = vpop.permute.xlu1 %724  ;;  %v720_v5 = vmul.f32 %v716_v28, %v712_v55  ;;  %v764_v28 = vmul.f32 %v760_v41, %v756_v38  ;;  %v785_v31 = vmul.f32 %v780_v44, %v778_v26 }
 0x1cb   : > { %v730_v9 = vmul.f32 %v725_v29, %v723_v0  ;;  %v789_v29 = vperm.slane %v232_v62, 6 }
 0x1cc   : > { %v722_v12 = vadd.f32 %v720_v5, %v711_v59 }
 0x1cd   : > { %v732_v14 = vadd.f32 %v730_v9, %v721_v39 }
 0x1ce   : > { %v733_v17 = vadd.f32 %v731_v16, %v722_v12 }
 0x1d1   : > { %v736_v53 = vpop.permute.xlu0 %735  ;;  %v793_v33 = vpop.permute.xlu2 %792 }
 0x1d2   : > { %v738_v61 = vpop.permute.xlu1 %737  ;;  %v741_v11 = vmul.f32 %v736_v53, %v734_v3  ;;  %v797_v42 = vmul.f32 %v793_v33, %v789_v29 }
 0x1d3   : > { %v742_v48 = vmul.f32 %v738_v61, %v734_v3 }
 0x1d4   : > { %v743_v6 = vadd.f32 %v741_v11, %v732_v14 }
 0x1d5   : > { %v744_v18 = vadd.f32 %v742_v48, %v733_v17 }
 0x1d6   : > { %v754_v24 = vadd.f32 %v752_v22, %v743_v6 }
 0x1d9   : > { %v749_v10 = vpop.permute.xlu0 %748 }
 0x1da   : > { %v758_v1 = vpop.permute.xlu1 %757  ;;  %v753_v20 = vmul.f32 %v749_v10, %v745_v7 }
 0x1db   : > { %v763_v19 = vmul.f32 %v758_v1, %v756_v38 }
 0x1dc   : > { %v755_v25 = vadd.f32 %v753_v20, %v744_v18 }
 0x1dd   : > { %v765_v27 = vadd.f32 %v763_v19, %v754_v24  ;;  %v1995_v19 = vld [vmem:[%s2188_s3] sm:$0xff] }
 0x1de   : > { %v766_v30 = vadd.f32 %v764_v28, %v755_v25  ;;  %v854_v18 = vperm.slane %v1995_v19, 0  ;;  %v878_v28 = vperm.slane %v1995_v19, 2 }
 0x1e1   : > { %v769_v15 = vpop.permute.xlu0 %768 }
 0x1e2   : > { %v771_v23 = vpop.permute.xlu1 %770  ;;  %v774_v21 = vmul.f32 %v769_v15, %v767_v47  ;;  %v867_v15 = vperm.slane %v1995_v19, 1 }
 0x1e3   : > { %v775_v57 = vmul.f32 %v771_v23, %v767_v47 }
 0x1e4   : > { %v776_v13 = vadd.f32 %v774_v21, %v765_v27 }
 0x1e5   : > { %v777_v56 = vadd.f32 %v775_v57, %v766_v30 }
 0x1e6   : > { %v787_v36 = vadd.f32 %v785_v31, %v776_v13 }
 0x1e9   : > { %v782_v34 = vpop.permute.xlu0 %781 }
 0x1ea   : > { %v786_v50 = vmul.f32 %v782_v34, %v778_v26  ;;  %v791_v32 = vpop.permute.xlu1 %790 }
 0x1eb   : > { %v796_v35 = vmul.f32 %v791_v32, %v789_v29  ;;  %v889_v32 = vperm.slane %v1995_v19, 3 }
 0x1ec   : > { %v788_v43 = vadd.f32 %v786_v50, %v777_v56 }
 0x1ed   : > { %v798_v37 = vadd.f32 %v796_v35, %v787_v36  ;;  %v900_v36 = vperm.slane %v1995_v19, 4 }
 0x1ee   : > { %v799_v45 = vadd.f32 %v797_v42, %v788_v43 }
 0x1ef   : > { %v804_v46 = vadd.f32 %v1466_v58, %v798_v37 }
 0x1f0   : > { %v805_v53 = vadd.f32 %v1466_v58, %v799_v45 }
 0x1f1   : > { %v806_v54 = vmax.f32 %v804_v46, 0.0 }
 0x1f2   : > { %v807_v61 = vmax.f32 %v805_v53, 0.0 }
 0x1f3   : > { %v809_v51 = vrot.slane %v806_v54, 1  ;;  %v812_v2 = vrot.slane %v806_v54, 7 }
 0x1f4   : > { %v813_v62 = vrot.slane %v807_v61, 7  ;;  %v818_v40 = vrot.slane %v807_v61, 5 }
 0x1f5   : > { %v820_v55 = vsel %vm243_vm0, %v809_v51, %v812_v2  ;;  %v911_v51 = vperm.slane %v1995_v19, 5 }
 0x1f6   : > { %824 = vrot.lane.b32.xlu0 %v820_v55, %s1478_s24  ;;  %v821_v63 = vsel %vm243_vm0, %v813_v62, %v818_v40  ;;  %v814_v41 = vsel %vm243_vm0, %v812_v2, %v813_v62  ;;  %v842_v0 = vsel %vm274_vm1, 0.0, %v820_v55 }
 0x1f7   : > { %828 = vrot.lane.b32.xlu2 %v821_v63, %s1478_s24  ;;  %826 = vrot.lane.b32.xlu1 %v814_v41, %s1478_s24  ;;  %v843_v3 = vsel %vm274_vm1, 0.0, %v814_v41  ;;  %v844_v12 = vsel %vm274_vm1, 0.0, %v821_v63 }
 0x1fe   : > { %833 = vrot.lane.b32.xlu0 %v820_v55, %s1479_s25 }
 0x1ff   : > { %837 = vrot.lane.b32.xlu2 %v821_v63, %s1479_s25  ;;  %835 = vrot.lane.b32.xlu1 %v814_v41, %s1479_s25 }
 0x251   : > { %v829_v39 = vpop.permute.xlu2 %828 }
 0x252   : > { %v847_v7 = vsel %vm278_vm2, %v844_v12, %v829_v39  ;;  %v2038_v12 = vld [vmem:[%s2188_s3 + $0x8] sm:$0x7f] }
 0x259   : > { %v838_v11 = vpop.permute.xlu2 %837 }
 0x25a   : > { %v850_v14 = vsel %vm282_vm3, %v847_v7, %v838_v11 }
 0x25b   : > { %v1957_v16 = vsel %vm286_vm4, %v850_v14, 0.0 }
 0x25c   : > { %v1026_v44 = vrot.slane %v1957_v16, 1 }
 0x268   : > { %v825_v52 = vpop.permute.xlu0 %824 }
 0x269   : > { %v827_v60 = vpop.permute.xlu1 %826  ;;  %v845_v49 = vsel %vm278_vm2, %v842_v0, %v825_v52  ;;  %v922_v0 = vperm.slane %v1995_v19, 6 }
 0x26a   : > { %v846_v5 = vsel %vm278_vm2, %v843_v3, %v827_v60  ;;  %v933_v3 = vperm.slane %v1995_v19, 7 }
 0x270   : > { %v834_v4 = vpop.permute.xlu0 %833 }
 0x271   : > { %v848_v8 = vsel %vm282_vm3, %v845_v49, %v834_v4  ;;  %v836_v9 = vpop.permute.xlu1 %835 }
 0x272   : > { %v1887_v10 = vsel %vm286_vm4, %v848_v8, 0.0  ;;  %v849_v59 = vsel %vm282_vm3, %v846_v5, %v836_v9 }
 0x273   : > { %v1891_v1 = vsel %vm286_vm4, %v849_v59, 0.0  ;;  %868 = vrot.lane.b32.xlu2 %v1887_v10, %s1480_s26  ;;  %857 = vrot.lane.b32.xlu0 %v1887_v10, %s1481_s27  ;;  %v1023_v48 = vrot.slane %v1887_v10, 1 }
 0x274   : > { %859 = vrot.lane.b32.xlu1 %v1891_v1, %s1481_s27  ;;  %v1024_v38 = vrot.slane %v1891_v1, 1  ;;  %v1194_v19 = vrot.slane %v1891_v1, 2 }
 0x276   : > { %v1963_v6 = vsel %vm459_vm5, %v1023_v48, %v1024_v38  ;;  %v1970_v47 = vsel %vm459_vm5, %v1024_v38, %v1026_v44  ;;  %v944_v48 = vperm.slane %v2038_v12, 0 }
 0x27b   : > { %881 = vrot.lane.b32.xlu2 %v1891_v1, %s1482_s28  ;;  %870 = vrot.lane.b32.xlu0 %v1891_v1, %s1480_s26 }
 0x27c   : > { %879 = vrot.lane.b32.xlu1 %v1887_v10, %s1482_s28 }
 0x283   : > { %901 = vrot.lane.b32.xlu2 %v1887_v10, %s1483_s29  ;;  %890 = vrot.lane.b32.xlu0 %v1887_v10, %s1484_s30 }
 0x284   : > { %892 = vrot.lane.b32.xlu1 %v1891_v1, %s1484_s30 }
 0x28b   : > { %914 = vrot.lane.b32.xlu2 %v1891_v1, %s1485_s6  ;;  %903 = vrot.lane.b32.xlu0 %v1891_v1, %s1483_s29 }
 0x28c   : > { %912 = vrot.lane.b32.xlu1 %v1887_v10, %s1485_s6 }
 0x293   : > { %934 = vrot.lane.b32.xlu2 %v1887_v10, %s1486_s7  ;;  %923 = vrot.lane.b32.xlu0 %v1887_v10, %s1487_s8 }
 0x294   : > { %925 = vrot.lane.b32.xlu1 %v1891_v1, %s1487_s8 }
 0x29b   : > { %947 = vrot.lane.b32.xlu2 %v1891_v1, %s1488_s9  ;;  %936 = vrot.lane.b32.xlu0 %v1891_v1, %s1486_s7 }
 0x29c   : > { %945 = vrot.lane.b32.xlu1 %v1887_v10, %s1488_s9 }
 0x2a3   : > { %967 = vrot.lane.b32.xlu2 %v1887_v10, %s1489_s10  ;;  %956 = vrot.lane.b32.xlu0 %v1887_v10, %s1490_s11 }
 0x2a4   : > { %958 = vrot.lane.b32.xlu1 %v1891_v1, %s1490_s11 }
 0x2ab   : > { %980 = vrot.lane.b32.xlu2 %v1891_v1, %s1491_s12  ;;  %969 = vrot.lane.b32.xlu0 %v1891_v1, %s1489_s10 }
 0x2ac   : > { %978 = vrot.lane.b32.xlu1 %v1887_v10, %s1491_s12 }
 0x2b3   : > { %1000 = vrot.lane.b32.xlu2 %v1887_v10, %s1492_s13  ;;  %989 = vrot.lane.b32.xlu0 %v1887_v10, %s1493_s14 }
 0x2b4   : > { %991 = vrot.lane.b32.xlu1 %v1891_v1, %s1493_s14 }
 0x2bb   : > { %1013 = vrot.lane.b32.xlu2 %v1891_v1, %s1494_s15  ;;  %1002 = vrot.lane.b32.xlu0 %v1891_v1, %s1492_s13  ;;  %v966_v1 = vperm.slane %v2038_v12, 2 }
 0x2bc   : > { %1011 = vrot.lane.b32.xlu1 %v1887_v10, %s1494_s15 }
 0x2c3   : > { %1039 = vrot.lane.b32.xlu2 %v1963_v6, %s1480_s26  ;;  %1028 = vrot.lane.b32.xlu0 %v1963_v6, %s1481_s27 }
 0x2c4   : > { %1030 = vrot.lane.b32.xlu1 %v1970_v47, %s1481_s27 }
 0x2cb   : > { %1052 = vrot.lane.b32.xlu2 %v1970_v47, %s1482_s28  ;;  %1041 = vrot.lane.b32.xlu0 %v1970_v47, %s1480_s26 }
 0x2cc   : > { %1050 = vrot.lane.b32.xlu1 %v1963_v6, %s1482_s28 }
 0x2cd   : > { %v869_v17 = vpop.permute.xlu2 %868 }
 0x2ce   : > { %v874_v21 = vmul.f32 %v869_v17, %v867_v15 }
 0x2d3   : > { %1072 = vrot.lane.b32.xlu2 %v1963_v6, %s1483_s29  ;;  %1061 = vrot.lane.b32.xlu0 %v1963_v6, %s1484_s30 }
 0x2d4   : > { %1063 = vrot.lane.b32.xlu1 %v1970_v47, %s1484_s30 }
 0x2d5   : > { %v882_v20 = vpop.permute.xlu2 %881 }
 0x2d6   : > { %v886_v34 = vmul.f32 %v882_v20, %v878_v28 }
 0x2db   : > { %1085 = vrot.lane.b32.xlu2 %v1970_v47, %s1485_s6  ;;  %1074 = vrot.lane.b32.xlu0 %v1970_v47, %s1483_s29 }
 0x2dc   : > { %1083 = vrot.lane.b32.xlu1 %v1963_v6, %s1485_s6 }
 0x2dd   : > { %v902_v22 = vpop.permute.xlu2 %901 }
 0x2de   : > { %v907_v46 = vmul.f32 %v902_v22, %v900_v36  ;;  %v1193_v22 = vrot.slane %v1887_v10, 2 }
 0x2e3   : > { %1105 = vrot.lane.b32.xlu2 %v1963_v6, %s1486_s7  ;;  %1094 = vrot.lane.b32.xlu0 %v1963_v6, %s1487_s8 }
 0x2e4   : > { %1096 = vrot.lane.b32.xlu1 %v1970_v47, %s1487_s8 }
 0x2e5   : > { %v915_v23 = vpop.permute.xlu2 %914  ;;  %v858_v24 = vpop.permute.xlu0 %857 }
 0x2e6   : > { %v863_v25 = vmul.f32 %v858_v24, %v854_v18  ;;  %v860_v26 = vpop.permute.xlu1 %859  ;;  %v919_v41 = vmul.f32 %v915_v23, %v911_v51  ;;  %v1196_v24 = vrot.slane %v1957_v16, 2 }
 0x2e7   : > { %v864_v29 = vmul.f32 %v860_v26, %v854_v18 }
 0x2e8   : > { %v876_v27 = vadd.f32 %v874_v21, %v863_v25  ;;  %v955_v25 = vperm.slane %v2038_v12, 1  ;;  %v2059_v10 = vsel %vm630_vm6, %v1194_v19, %v1196_v24 }
 0x2eb   : > { %1118 = vrot.lane.b32.xlu2 %v1970_v47, %s1488_s9  ;;  %1107 = vrot.lane.b32.xlu0 %v1970_v47, %s1486_s7 }
 0x2ec   : > { %1116 = vrot.lane.b32.xlu1 %v1963_v6, %s1488_s9 }
 0x2ed   : > { %v935_v57 = vpop.permute.xlu2 %934  ;;  %v871_v13 = vpop.permute.xlu0 %870 }
 0x2ee   : > { %v875_v30 = vmul.f32 %v871_v13, %v867_v15  ;;  %v880_v31 = vpop.permute.xlu1 %879  ;;  %v940_v39 = vmul.f32 %v935_v57, %v933_v3 }
 0x2ef   : > { %v885_v33 = vmul.f32 %v880_v31, %v878_v28 }
 0x2f0   : > { %v877_v56 = vadd.f32 %v875_v30, %v864_v29 }
 0x2f1   : > { %v887_v50 = vadd.f32 %v885_v33, %v876_v27  ;;  %v977_v33 = vperm.slane %v2038_v12, 3 }
 0x2f2   : > { %v888_v58 = vadd.f32 %v886_v34, %v877_v56 }
 0x2f3   : > { %1138 = vrot.lane.b32.xlu2 %v1963_v6, %s1489_s10  ;;  %1127 = vrot.lane.b32.xlu0 %v1963_v6, %s1490_s11 }
 0x2f4   : > { %1129 = vrot.lane.b32.xlu1 %v1970_v47, %s1490_s11 }
 0x2f5   : > { %v948_v35 = vpop.permute.xlu2 %947  ;;  %v891_v42 = vpop.permute.xlu0 %890 }
 0x2f6   : > { %v896_v43 = vmul.f32 %v891_v42, %v889_v32  ;;  %v893_v37 = vpop.permute.xlu1 %892  ;;  %v952_v18 = vmul.f32 %v948_v35, %v944_v48 }
 0x2f7   : > { %v897_v45 = vmul.f32 %v893_v37, %v889_v32 }
 0x2f8   : > { %v898_v53 = vadd.f32 %v896_v43, %v887_v50  ;;  %v988_v43 = vperm.slane %v2038_v12, 4 }
 0x2f9   : > { %v899_v54 = vadd.f32 %v897_v45, %v888_v58  ;;  %v999_v45 = vperm.slane %v2038_v12, 5 }
 0x2fa   : > { %v909_v61 = vadd.f32 %v907_v46, %v898_v53 }
 0x2fb   : > { %1151 = vrot.lane.b32.xlu2 %v1970_v47, %s1491_s12  ;;  %1140 = vrot.lane.b32.xlu0 %v1970_v47, %s1489_s10 }
 0x2fc   : > { %1149 = vrot.lane.b32.xlu1 %v1963_v6, %s1491_s12 }
 0x2fd   : > { %v968_v2 = vpop.permute.xlu2 %967  ;;  %v904_v62 = vpop.permute.xlu0 %903 }
 0x2fe   : > { %v908_v40 = vmul.f32 %v904_v62, %v900_v36  ;;  %v913_v55 = vpop.permute.xlu1 %912  ;;  %v973_v13 = vmul.f32 %v968_v2, %v966_v1 }
 0x2ff   : > { %v918_v63 = vmul.f32 %v913_v55, %v911_v51 }
 0x300   : > { %v910_v52 = vadd.f32 %v908_v40, %v899_v54 }
 0x301   : > { %v920_v60 = vadd.f32 %v918_v63, %v909_v61  ;;  %v1010_v63 = vperm.slane %v2038_v12, 6 }
 0x302   : > { %v921_v49 = vadd.f32 %v919_v41, %v910_v52 }
 0x303   : > { %1171 = vrot.lane.b32.xlu2 %v1963_v6, %s1492_s13  ;;  %1160 = vrot.lane.b32.xlu0 %v1963_v6, %s1493_s14 }
 0x304   : > { %1162 = vrot.lane.b32.xlu1 %v1970_v47, %s1493_s14 }
 0x305   : > { %v981_v4 = vpop.permute.xlu2 %980  ;;  %v924_v5 = vpop.permute.xlu0 %923 }
 0x306   : > { %v929_v8 = vmul.f32 %v924_v5, %v922_v0  ;;  %v926_v9 = vpop.permute.xlu1 %925  ;;  %v985_v36 = vmul.f32 %v981_v4, %v977_v33  ;;  %v2089_v5 = vld [vmem:[%s2188_s3 + $0x10] sm:$0xff] }
 0x307   : > { %v930_v59 = vmul.f32 %v926_v9, %v922_v0  ;;  %v1021_v9 = vperm.slane %v2089_v5, 0 }
 0x308   : > { %v931_v11 = vadd.f32 %v929_v8, %v920_v60 }
 0x309   : > { %v932_v7 = vadd.f32 %v930_v59, %v921_v49 }
 0x30a   : > { %v942_v14 = vadd.f32 %v940_v39, %v931_v11  ;;  %v1038_v39 = vperm.slane %v2089_v5, 1 }
 0x30b   : > { %1184 = vrot.lane.b32.xlu2 %v1970_v47, %s1494_s15  ;;  %1173 = vrot.lane.b32.xlu0 %v1970_v47, %s1492_s13  ;;  %v2051_v47 = vsel %vm630_vm6, %v1193_v22, %v1194_v19  ;;  %v1049_v22 = vperm.slane %v2089_v5, 2 }
 0x30c   : > { %1182 = vrot.lane.b32.xlu1 %v1963_v6, %s1494_s15 }
 0x30d   : > { %v1001_v38 = vpop.permute.xlu2 %1000  ;;  %v937_v44 = vpop.permute.xlu0 %936 }
 0x30e   : > { %v941_v17 = vmul.f32 %v937_v44, %v933_v3  ;;  %v946_v20 = vpop.permute.xlu1 %945  ;;  %v1006_v2 = vmul.f32 %v1001_v38, %v999_v45 }
 0x30f   : > { %v951_v15 = vmul.f32 %v946_v20, %v944_v48 }
 0x310   : > { %v943_v23 = vadd.f32 %v941_v17, %v932_v7 }
 0x311   : > { %v953_v21 = vadd.f32 %v951_v15, %v942_v14 }
 0x312   : > { %v954_v6 = vadd.f32 %v952_v18, %v943_v23 }
 0x313   : > { %1209 = vrot.lane.b32.xlu2 %v2051_v47, %s1480_s26  ;;  %1198 = vrot.lane.b32.xlu0 %v2051_v47, %s1481_s27 }
 0x314   : > { %1200 = vrot.lane.b32.xlu1 %v2059_v10, %s1481_s27 }
 0x315   : > { %v1014_v16 = vpop.permute.xlu2 %1013  ;;  %v957_v26 = vpop.permute.xlu0 %956 }
 0x316   : > { %v962_v27 = vmul.f32 %v957_v26, %v955_v25  ;;  %v959_v28 = vpop.permute.xlu1 %958  ;;  %v1018_v3 = vmul.f32 %v1014_v16, %v1010_v63  ;;  %v1071_v26 = vperm.slane %v2089_v5, 4 }
 0x317   : > { %v963_v57 = vmul.f32 %v959_v28, %v955_v25 }
 0x318   : > { %v964_v29 = vadd.f32 %v962_v27, %v953_v21 }
 0x319   : > { %v965_v30 = vadd.f32 %v963_v57, %v954_v6 }
 0x31a   : > { %v975_v31 = vadd.f32 %v973_v13, %v964_v29 }
 0x31b   : > { %1222 = vrot.lane.b32.xlu2 %v2059_v10, %s1482_s28  ;;  %1211 = vrot.lane.b32.xlu0 %v2059_v10, %s1480_s26 }
 0x31c   : > { %1220 = vrot.lane.b32.xlu1 %v2051_v47, %s1482_s28 }
 0x31d   : > { %v970_v34 = vpop.permute.xlu0 %969  ;;  %v1040_v56 = vpop.permute.xlu2 %1039 }
 0x31e   : > { %v974_v50 = vmul.f32 %v970_v34, %v966_v1  ;;  %v979_v32 = vpop.permute.xlu1 %978  ;;  %v1045_v38 = vmul.f32 %v1040_v56, %v1038_v39  ;;  %v1060_v1 = vperm.slane %v2089_v5, 3  ;;  %v1082_v56 = vperm.slane %v2089_v5, 5 }
 0x31f   : > { %v984_v58 = vmul.f32 %v979_v32, %v977_v33 }
 0x320   : > { %v976_v35 = vadd.f32 %v974_v50, %v965_v30 }
 0x321   : > { %v986_v42 = vadd.f32 %v984_v58, %v975_v31 }
 0x322   : > { %v987_v37 = vadd.f32 %v985_v36, %v976_v35 }
 0x323   : > { %1242 = vrot.lane.b32.xlu2 %v2051_v47, %s1483_s29  ;;  %1231 = vrot.lane.b32.xlu0 %v2051_v47, %s1484_s30 }
 0x324   : > { %1233 = vrot.lane.b32.xlu1 %v2059_v10, %s1484_s30 }
 0x325   : > { %v990_v46 = vpop.permute.xlu0 %989  ;;  %v1053_v53 = vpop.permute.xlu2 %1052 }
 0x326   : > { %v995_v54 = vmul.f32 %v990_v46, %v988_v43  ;;  %v992_v61 = vpop.permute.xlu1 %991  ;;  %v1057_v21 = vmul.f32 %v1053_v53, %v1049_v22  ;;  %v1104_v53 = vperm.slane %v2089_v5, 7 }
 0x327   : > { %v996_v51 = vmul.f32 %v992_v61, %v988_v43 }
 0x328   : > { %v997_v62 = vadd.f32 %v995_v54, %v986_v42 }
 0x329   : > { %v998_v40 = vadd.f32 %v996_v51, %v987_v37 }
 0x32a   : > { %v1008_v55 = vadd.f32 %v1006_v2, %v997_v62 }
 0x32b   : > { %1255 = vrot.lane.b32.xlu2 %v2059_v10, %s1485_s6  ;;  %1244 = vrot.lane.b32.xlu0 %v2059_v10, %s1483_s29 }
 0x32c   : > { %1253 = vrot.lane.b32.xlu1 %v2051_v47, %s1485_s6 }
 0x32d   : > { %v1003_v41 = vpop.permute.xlu0 %1002  ;;  %v1073_v52 = vpop.permute.xlu2 %1072 }
 0x32e   : > { %v1007_v60 = vmul.f32 %v1003_v41, %v999_v45  ;;  %v1012_v0 = vpop.permute.xlu1 %1011  ;;  %v1078_v30 = vmul.f32 %v1073_v52, %v1071_v26  ;;  %v1093_v45 = vperm.slane %v2089_v5, 6 }
 0x32f   : > { %v1017_v49 = vmul.f32 %v1012_v0, %v1010_v63  ;;  %v2132_v63 = vld [vmem:[%s2188_s3 + $0x18] sm:$0x7f] }
 0x330   : > { %v1009_v4 = vadd.f32 %v1007_v60, %v998_v40  ;;  %v1115_v60 = vperm.slane %v2132_v63, 0 }
 0x331   : > { %v1019_v8 = vadd.f32 %v1017_v49, %v1008_v55 }
 0x332   : > { %v1020_v59 = vadd.f32 %v1018_v3, %v1009_v4 }
 0x333   : > { %1275 = vrot.lane.b32.xlu2 %v2051_v47, %s1486_s7  ;;  %1264 = vrot.lane.b32.xlu0 %v2051_v47, %s1487_s8 }
 0x334   : > { %1266 = vrot.lane.b32.xlu1 %v2059_v10, %s1487_s8 }
 0x335   : > { %v1086_v11 = vpop.permute.xlu2 %1085  ;;  %v1029_v12 = vpop.permute.xlu0 %1028 }
 0x336   : > { %v1034_v7 = vmul.f32 %v1029_v12, %v1021_v9  ;;  %v1031_v14 = vpop.permute.xlu1 %1030  ;;  %v1090_v42 = vmul.f32 %v1086_v11, %v1082_v56  ;;  %v1137_v12 = vperm.slane %v2132_v63, 2 }
 0x337   : > { %v1035_v48 = vmul.f32 %v1031_v14, %v1021_v9 }
 0x338   : > { %v1036_v44 = vadd.f32 %v1034_v7, %v1019_v8 }
 0x339   : > { %v1037_v17 = vadd.f32 %v1035_v48, %v1020_v59 }
 0x33a   : > { %v1047_v20 = vadd.f32 %v1045_v38, %v1036_v44 }
 0x33b   : > { %1288 = vrot.lane.b32.xlu2 %v2059_v10, %s1488_s9  ;;  %1277 = vrot.lane.b32.xlu0 %v2059_v10, %s1486_s7 }
 0x33c   : > { %1286 = vrot.lane.b32.xlu1 %v2051_v47, %s1488_s9 }
 0x33d   : > { %v1106_v19 = vpop.permute.xlu2 %1105  ;;  %v1042_v15 = vpop.permute.xlu0 %1041 }
 0x33e   : > { %v1046_v18 = vmul.f32 %v1042_v15, %v1038_v39  ;;  %v1051_v23 = vpop.permute.xlu1 %1050  ;;  %v1111_v40 = vmul.f32 %v1106_v19, %v1104_v53  ;;  %v1126_v39 = vperm.slane %v2132_v63, 1 }
 0x33f   : > { %v1056_v24 = vmul.f32 %v1051_v23, %v1049_v22 }
 0x340   : > { %v1048_v25 = vadd.f32 %v1046_v18, %v1037_v17 }
 0x341   : > { %v1058_v6 = vadd.f32 %v1056_v24, %v1047_v20 }
 0x342   : > { %v1059_v16 = vadd.f32 %v1057_v21, %v1048_v25 }
 0x343   : > { %1308 = vrot.lane.b32.xlu2 %v2051_v47, %s1489_s10  ;;  %1297 = vrot.lane.b32.xlu0 %v2051_v47, %s1490_s11 }
 0x344   : > { %1299 = vrot.lane.b32.xlu1 %v2059_v10, %s1490_s11 }
 0x345   : > { %v1119_v27 = vpop.permute.xlu2 %1118  ;;  %v1062_v28 = vpop.permute.xlu0 %1061 }
 0x346   : > { %v1067_v57 = vmul.f32 %v1062_v28, %v1060_v1  ;;  %v1064_v13 = vpop.permute.xlu1 %1063  ;;  %v1123_v8 = vmul.f32 %v1119_v27, %v1115_v60 }
 0x347   : > { %v1068_v29 = vmul.f32 %v1064_v13, %v1060_v1 }
 0x348   : > { %v1069_v31 = vadd.f32 %v1067_v57, %v1058_v6 }
 0x349   : > { %v1070_v33 = vadd.f32 %v1068_v29, %v1059_v16  ;;  %v1148_v29 = vperm.slane %v2132_v63, 3 }
 0x34a   : > { %v1080_v34 = vadd.f32 %v1078_v30, %v1069_v31  ;;  %v1159_v30 = vperm.slane %v2132_v63, 4 }
 0x34b   : > { %1321 = vrot.lane.b32.xlu2 %v2059_v10, %s1491_s12  ;;  %1310 = vrot.lane.b32.xlu0 %v2059_v10, %s1489_s10 }
 0x34c   : > { %1319 = vrot.lane.b32.xlu1 %v2051_v47, %s1491_s12 }
 0x34d   : > { %v1139_v50 = vpop.permute.xlu2 %1138  ;;  %v1075_v32 = vpop.permute.xlu0 %1074 }
 0x34e   : > { %v1079_v58 = vmul.f32 %v1075_v32, %v1071_v26  ;;  %v1084_v36 = vpop.permute.xlu1 %1083  ;;  %v1144_v38 = vmul.f32 %v1139_v50, %v1137_v12 }
 0x34f   : > { %v1089_v35 = vmul.f32 %v1084_v36, %v1082_v56  ;;  %v1170_v36 = vperm.slane %v2132_v63, 5 }
 0x350   : > { %v1081_v43 = vadd.f32 %v1079_v58, %v1070_v33 }
 0x351   : > { %v1091_v37 = vadd.f32 %v1089_v35, %v1080_v34 }
 0x352   : > { %v1092_v46 = vadd.f32 %v1090_v42, %v1081_v43  ;;  %v2153_v43 = vld [vmem:[%s2188_s3 + $0x20] sm:$0xff] }
 0x353   : > { %1341 = vrot.lane.b32.xlu2 %v2051_v47, %s1492_s13  ;;  %1330 = vrot.lane.b32.xlu0 %v2051_v47, %s1493_s14 }
 0x354   : > { %1332 = vrot.lane.b32.xlu1 %v2059_v10, %s1493_s14 }
 0x355   : > { %v1152_v54 = vpop.permute.xlu2 %1151  ;;  %v1095_v61 = vpop.permute.xlu0 %1094 }
 0x356   : > { %v1100_v51 = vmul.f32 %v1095_v61, %v1093_v45  ;;  %v1097_v2 = vpop.permute.xlu1 %1096  ;;  %v1156_v42 = vmul.f32 %v1152_v54, %v1148_v29 }
 0x357   : > { %v1101_v62 = vmul.f32 %v1097_v2, %v1093_v45  ;;  %v1181_v45 = vperm.slane %v2132_v63, 6 }
 0x358   : > { %v1102_v55 = vadd.f32 %v1100_v51, %v1091_v37 }
 0x359   : > { %v1103_v41 = vadd.f32 %v1101_v62, %v1092_v46 }
 0x35a   : > { %v1113_v52 = vadd.f32 %v1111_v40, %v1102_v55 }
 0x35b   : > { %1354 = vrot.lane.b32.xlu2 %v2059_v10, %s1494_s15  ;;  %1343 = vrot.lane.b32.xlu0 %v2059_v10, %s1492_s13  ;;  %s224_s13 = scalar_lea.vmem %s2190_s5, %s1439_s20 }
 0x35c   : > { %1352 = vrot.lane.b32.xlu1 %v2051_v47, %s1494_s15 }
 0x35d   : > { %v1108_v0 = vpop.permute.xlu0 %1107  ;;  %v1172_v4 = vpop.permute.xlu2 %1171 }
 0x35e   : > { %v1112_v49 = vmul.f32 %v1108_v0, %v1104_v53  ;;  %v1117_v3 = vpop.permute.xlu1 %1116  ;;  %v1192_v53 = vperm.slane %v2153_v43, 0  ;;  %v1177_v2 = vmul.f32 %v1172_v4, %v1170_v36 }
 0x35f   : > { %v1122_v5 = vmul.f32 %v1117_v3, %v1115_v60 }
 0x360   : > { %v1114_v9 = vadd.f32 %v1112_v49, %v1103_v41  ;;  %v1208_v49 = vperm.slane %v2153_v43, 1 }
 0x361   : > { %v1124_v59 = vadd.f32 %v1122_v5, %v1113_v52 }
 0x362   : > { %v1125_v11 = vadd.f32 %v1123_v8, %v1114_v9  ;;  %v1219_v8 = vperm.slane %v2153_v43, 2 }
 0x365   : > { %v1128_v7 = vpop.permute.xlu0 %1127  ;;  %v1185_v47 = vpop.permute.xlu2 %1184 }
 0x366   : > { %v1133_v10 = vmul.f32 %v1128_v7, %v1126_v39  ;;  %v1130_v14 = vpop.permute.xlu1 %1129  ;;  %v1189_v5 = vmul.f32 %v1185_v47, %v1181_v45 }
 0x367   : > { %v1134_v48 = vmul.f32 %v1130_v14, %v1126_v39 }
 0x368   : > { %v1135_v44 = vadd.f32 %v1133_v10, %v1124_v59  ;;  %v1230_v59 = vperm.slane %v2153_v43, 3 }
 0x369   : > { %v1136_v17 = vadd.f32 %v1134_v48, %v1125_v11 }
 0x36a   : > { %v1146_v20 = vadd.f32 %v1144_v38, %v1135_v44 }
 0x36d   : > { %v1141_v22 = vpop.permute.xlu0 %1140  ;;  %v1210_v15 = vpop.permute.xlu2 %1209 }
 0x36e   : > { %v1150_v19 = vpop.permute.xlu1 %1149  ;;  %v1145_v33 = vmul.f32 %v1141_v22, %v1137_v12  ;;  %v1215_v11 = vmul.f32 %v1210_v15, %v1208_v49 }
 0x36f   : > { %v1155_v34 = vmul.f32 %v1150_v19, %v1148_v29 }
 0x370   : > { %v1147_v58 = vadd.f32 %v1145_v33, %v1136_v17  ;;  %v238_v33 = vld [vmem:[%s2188_s3 + $0x28] sm:$0x7f] }
 0x371   : > { %v1157_v35 = vadd.f32 %v1155_v34, %v1146_v20  ;;  %v1241_v20 = vperm.slane %v2153_v43, 4 }
 0x372   : > { %v1158_v61 = vadd.f32 %v1156_v42, %v1147_v58 }
 0x375   : > { %v1161_v18 = vpop.permute.xlu0 %1160  ;;  %v1223_v24 = vpop.permute.xlu2 %1222 }
 0x376   : > { %v1163_v23 = vpop.permute.xlu1 %1162  ;;  %v1166_v32 = vmul.f32 %v1161_v18, %v1159_v30  ;;  %v1227_v22 = vmul.f32 %v1223_v24, %v1219_v8  ;;  %v1252_v18 = vperm.slane %v2153_v43, 5 }
 0x377   : > { %v1167_v37 = vmul.f32 %v1163_v23, %v1159_v30 }
 0x378   : > { %v1168_v46 = vadd.f32 %v1166_v32, %v1157_v35 }
 0x379   : > { %v1169_v41 = vadd.f32 %v1167_v37, %v1158_v61 }
 0x37a   : > { %v1179_v52 = vadd.f32 %v1177_v2, %v1168_v46 }
 0x37d   : > { %v1174_v21 = vpop.permute.xlu0 %1173  ;;  %v1243_v16 = vpop.permute.xlu2 %1242 }
 0x37e   : > { %v1183_v25 = vpop.permute.xlu1 %1182  ;;  %v1178_v51 = vmul.f32 %v1174_v21, %v1170_v36  ;;  %v1263_v21 = vperm.slane %v2153_v43, 6 }
 0x37f   : > { %v1188_v62 = vmul.f32 %v1183_v25, %v1181_v45 }
 0x380   : > { %v1180_v0 = vadd.f32 %v1178_v51, %v1169_v41 }
 0x381   : > { %v1190_v3 = vadd.f32 %v1188_v62, %v1179_v52 }
 0x382   : > { %v1191_v4 = vadd.f32 %v1189_v5, %v1180_v0  ;;  %v1329_v0 = vperm.slane %v238_v33, 4 }
 0x385   : > { %v1199_v6 = vpop.permute.xlu0 %1198  ;;  %v2143_v28 = vpop.permute.xlu2 %1255 }
 0x386   : > { %v1201_v1 = vpop.permute.xlu1 %1200  ;;  %v1204_v60 = vmul.f32 %v1199_v6, %v1192_v53  ;;  %v1248_v6 = vmul.f32 %v1243_v16, %v1241_v20  ;;  %v1260_v58 = vmul.f32 %v2143_v28, %v1252_v18 }
 0x387   : > { %v1205_v63 = vmul.f32 %v1201_v1, %v1192_v53 }
 0x388   : > { %v1206_v9 = vadd.f32 %v1204_v60, %v1190_v3 }
 0x389   : > { %v1207_v10 = vadd.f32 %v1205_v63, %v1191_v4 }
 0x38a   : > { %v1217_v48 = vadd.f32 %v1215_v11, %v1206_v9  ;;  %v1340_v11 = vperm.slane %v238_v33, 5 }
 0x38d   : > { %v1212_v26 = vpop.permute.xlu0 %1211  ;;  %v2147_v31 = vpop.permute.xlu2 %1275 }
 0x38e   : > { %v1221_v27 = vpop.permute.xlu1 %1220  ;;  %v1216_v39 = vmul.f32 %v1212_v26, %v1208_v49 }
 0x38f   : > { %v1226_v12 = vmul.f32 %v1221_v27, %v1219_v8 }
 0x390   : > { %v1218_v17 = vadd.f32 %v1216_v39, %v1207_v10 }
 0x391   : > { %v1228_v47 = vadd.f32 %v1226_v12, %v1217_v48 }
 0x392   : > { %v1229_v25 = vadd.f32 %v1227_v22, %v1218_v17 }
 0x395   : > { %v1232_v57 = vpop.permute.xlu0 %1231  ;;  %v2157_v40 = vpop.permute.xlu2 %1288 }
 0x396   : > { %v1234_v13 = vpop.permute.xlu1 %1233  ;;  %v1237_v38 = vmul.f32 %v1232_v57, %v1230_v59 }
 0x397   : > { %v1238_v19 = vmul.f32 %v1234_v13, %v1230_v59  ;;  %v1274_v13 = vperm.slane %v2153_v43, 7  ;;  %v1307_v43 = vperm.slane %v238_v33, 2 }
 0x398   : > { %v1239_v23 = vadd.f32 %v1237_v38, %v1228_v47 }
 0x399   : > { %v1240_v27 = vadd.f32 %v1238_v19, %v1229_v25  ;;  %v1281_v37 = vmul.f32 %v2147_v31, %v1274_v13  ;;  %v1467_v19 = vld [vmem:[%s2189_s4] ss:$0 sm:$0xff] }
 0x39a   : > { %v1250_v57 = vadd.f32 %v1248_v6, %v1239_v23 }
 0x39d   : > { %v1245_v56 = vpop.permute.xlu0 %1244  ;;  %v1309_v44 = vpop.permute.xlu2 %1308 }
 0x39e   : > { %v1254_v50 = vpop.permute.xlu1 %1253  ;;  %v1249_v15 = vmul.f32 %v1245_v56, %v1241_v20  ;;  %v1285_v56 = vperm.slane %v238_v33, 0  ;;  %v1314_v5 = vmul.f32 %v1309_v44, %v1307_v43 }
 0x39f   : > { %v1259_v1 = vmul.f32 %v1254_v50, %v1252_v18  ;;  %v1296_v50 = vperm.slane %v238_v33, 1 }
 0x3a0   : > { %v1251_v24 = vadd.f32 %v1249_v15, %v1240_v27  ;;  %v1293_v41 = vmul.f32 %v2157_v40, %v1285_v56  ;;  %v1468_v27 = vld [vmem:[%s1541_s23] sm:$0xff] }
 0x3a1   : > { %v1261_v34 = vadd.f32 %v1259_v1, %v1250_v57  ;;  %v1469_v57 = vld [vmem:[%s1541_s23 + $0x8] sm:$0xff] }
 0x3a2   : > { %v1262_v35 = vadd.f32 %v1260_v58, %v1251_v24 }
 0x3a5   : > { %v1265_v55 = vpop.permute.xlu0 %1264  ;;  %v1322_v32 = vpop.permute.xlu2 %1321 }
 0x3a6   : > { %v1267_v54 = vpop.permute.xlu1 %1266  ;;  %v1270_v30 = vmul.f32 %v1265_v55, %v1263_v21 }
 0x3a7   : > { %v1271_v36 = vmul.f32 %v1267_v54, %v1263_v21  ;;  %v1318_v54 = vperm.slane %v238_v33, 3 }
 0x3a8   : > { %v1272_v16 = vadd.f32 %v1270_v30, %v1261_v34 }
 0x3a9   : > { %v1273_v53 = vadd.f32 %v1271_v36, %v1262_v35 }
 0x3aa   : > { %v1283_v51 = vadd.f32 %v1281_v37, %v1272_v16 }
 0x3ad   : > { %v1278_v7 = vpop.permute.xlu0 %1277  ;;  %v1342_v52 = vpop.permute.xlu2 %1341 }
 0x3ae   : > { %v1287_v14 = vpop.permute.xlu1 %1286  ;;  %v1282_v42 = vmul.f32 %v1278_v7, %v1274_v13  ;;  %v1326_v7 = vmul.f32 %v1322_v32, %v1318_v54  ;;  %v1347_v38 = vmul.f32 %v1342_v52, %v1340_v11 }
 0x3af   : > { %v1292_v45 = vmul.f32 %v1287_v14, %v1285_v56  ;;  %v1351_v14 = vperm.slane %v238_v33, 6 }
 0x3b0   : > { %v1284_v62 = vadd.f32 %v1282_v42, %v1273_v53 }
 0x3b1   : > { %v1294_v55 = vadd.f32 %v1292_v45, %v1283_v51 }
 0x3b2   : > { %v1295_v49 = vadd.f32 %v1293_v41, %v1284_v62 }
 0x3b5   : > { %v1298_v26 = vpop.permute.xlu0 %1297  ;;  %v1355_v17 = vpop.permute.xlu2 %1354 }
 0x3b6   : > { %v1300_v29 = vpop.permute.xlu1 %1299  ;;  %v1303_v2 = vmul.f32 %v1298_v26, %v1296_v50  ;;  %v1359_v21 = vmul.f32 %v1355_v17, %v1351_v14 }
 0x3b7   : > { %v1304_v28 = vmul.f32 %v1300_v29, %v1296_v50 }
 0x3b8   : > { %v1305_v60 = vadd.f32 %v1303_v2, %v1294_v55 }
 0x3b9   : > { %v1306_v8 = vadd.f32 %v1304_v28, %v1295_v49 }
 0x3ba   : > { %v1316_v59 = vadd.f32 %v1314_v5, %v1305_v60 }
 0x3bd   : > { %v1311_v46 = vpop.permute.xlu0 %1310 }
 0x3be   : > { %v1320_v61 = vpop.permute.xlu1 %1319  ;;  %v1315_v3 = vmul.f32 %v1311_v46, %v1307_v43 }
 0x3bf   : > { %v1325_v31 = vmul.f32 %v1320_v61, %v1318_v54 }
 0x3c0   : > { %v1317_v39 = vadd.f32 %v1315_v3, %v1306_v8 }
 0x3c1   : > { %v1327_v12 = vadd.f32 %v1325_v31, %v1316_v59 }
 0x3c2   : > { %v1328_v48 = vadd.f32 %v1326_v7, %v1317_v39 }
 0x3c5   : > { %v1331_v63 = vpop.permute.xlu0 %1330 }
 0x3c6   : > { %v1333_v9 = vpop.permute.xlu1 %1332  ;;  %v1336_v4 = vmul.f32 %v1331_v63, %v1329_v0 }
 0x3c7   : > { %v1337_v10 = vmul.f32 %v1333_v9, %v1329_v0 }
 0x3c8   : > { %v1338_v40 = vadd.f32 %v1336_v4, %v1327_v12 }
 0x3c9   : > { %v1339_v44 = vadd.f32 %v1337_v10, %v1328_v48 }
 0x3ca   : > { %v1349_v18 = vadd.f32 %v1347_v38, %v1338_v40 }
 0x3cd   : > { %v1344_v20 = vpop.permute.xlu0 %1343 }
 0x3ce   : > { %v1348_v47 = vmul.f32 %v1344_v20, %v1340_v11  ;;  %v1353_v22 = vpop.permute.xlu1 %1352 }
 0x3cf   : > { %v1358_v23 = vmul.f32 %v1353_v22, %v1351_v14 }
 0x3d0   : > { %v1350_v25 = vadd.f32 %v1348_v47, %v1339_v44 }
 0x3d1   : > { %v1360_v15 = vadd.f32 %v1358_v23, %v1349_v18 }
 0x3d2   : > { %v1361_v6 = vadd.f32 %v1359_v21, %v1350_v25 }
 0x3d3   : > { %v1366_v1 = vadd.f32 %v1467_v19, %v1360_v15 }
 0x3d4   : > { %v1367_v26 = vadd.f32 %v1467_v19, %v1361_v6 }
 0x3d5   : > { %v1368_v29 = vadd.f32 %v1468_v27, %v1366_v1 }
 0x3d6   : > { %v1369_v30 = vadd.f32 %v1469_v57, %v1367_v26 }
 0x3d7   : > { %1371 = vst.msk [vmem:[%s224_s13] sm:$0xff] %vm1370_vm7, %v1368_v29 }
 0x3d8   : > { %1372 = vst.msk [vmem:[%s224_s13 + $0x8] sm:$0xff] %vm1370_vm7, %v1369_v30 }
 0x3d9 PF: > { %s15_s18 = sadd.s32 1, %s1476_s18  }
 0x3da   : > { %p12_p4 = scmp.ge.s32.totalorder %s15_s18, 4  }
 0x3dc   :  { %14 = sbr.rel (!%p12_p4) target bundleno = 1 (0x1), region = 70 }

</bundles_post_ra>
